<compile_context>
chip_gen: v7x
topology: tpu7x:2x2x1
jax: 0.10.0
libtpu: 0.0.40
codegen_flags: <defaults>
</compile_context>

<pallas_src>
import math
import jax
import jax.numpy as jnp
from jax import lax
from jax.experimental import pallas as pl
from jax.experimental.pallas import tpu as pltpu


def _layer_norm(x, w, b, eps=1e-5):
    mu = jnp.mean(x, axis=-1, keepdims=True)
    var = jnp.mean(jnp.square(x - mu), axis=-1, keepdims=True)
    return (x - mu) * lax.rsqrt(var + eps) * w + b


def _softmax_last(x):
    x = x - jnp.max(x, axis=-1, keepdims=True)
    e = jnp.exp(x)
    return e / jnp.sum(e, axis=-1, keepdims=True)


def make_kernel(B, S, F, D, H, num_layers, dff, C, dff_chunk, seg):
    BS = B * S
    n_chunks = dff // dff_chunk

    def kernel(x_ref, pe_ref, w_in_ref, b_in_ref,
               wqkv_ref, wo_ref, w1_ref, w2_ref, pvec_ref, b1_ref,
               wfc_ref, bfc_ref, hmask_ref, hmaskt_ref,
               out_ref, h_ref):
        l = pl.program_id(0)

        # ---- prologue (grid step 0): input linear + positional encoding ----
        @pl.when(l == 0)
        def _():
            x = x_ref[...].reshape(BS, F).astype(jnp.bfloat16)
            h = jnp.dot(x, w_in_ref[...],
                        preferred_element_type=jnp.float32) + b_in_ref[...]
            h = h.reshape(B, S, D) + pe_ref[...][None, :, :]
            h_ref[...] = h.reshape(BS, D)

        pvec = pvec_ref[...]                     # (9, D) f32: packed small params
        h2 = h_ref[...]                          # (BS, D) f32 residual stream
        h2_bf = h2.astype(jnp.bfloat16)

        # ---- fused Q/K/V projection: one bf16 matmul, 128-lane-aligned split ----
        qkv = jnp.dot(h2_bf, wqkv_ref[...], preferred_element_type=jnp.float32)
        # 1/sqrt(Dh) already folded into the Q weights/bias at pack time.
        q3 = (qkv[:, 0:D] + pvec[0:1]).reshape(B, S, D)
        k3 = (qkv[:, seg:seg + D] + pvec[1:2]).reshape(B, S, D)
        v3 = (qkv[:, 2 * seg:2 * seg + D] + pvec[2:3]).reshape(B, S, D)

        # ---- self-attention over the batch axis (batch_first=False quirk of the
        #      reference module): softmax over keys j for each (seq pos, head) ----
        prod = (q3[:, None, :, :] * k3[None, :, :, :]).astype(jnp.bfloat16)  # (B,B,S,D)
        sc = jnp.dot(prod.reshape(B * B * S, D), hmask_ref[...],
                     preferred_element_type=jnp.float32).reshape(B, B, S, H)
        m = jnp.max(sc, axis=1, keepdims=True)
        e = jnp.exp(sc - m)
        p = e / jnp.sum(e, axis=1, keepdims=True)             # f32 softmax (VPU/EUP)
        p_d = jnp.dot(p.astype(jnp.bfloat16).reshape(B * B * S, H), hmaskt_ref[...],
                      preferred_element_type=jnp.float32).reshape(B, B, S, D)
        attn = jnp.sum(p_d * v3[None, :, :, :], axis=1).reshape(BS, D)

        attn_out = jnp.dot(attn.astype(jnp.bfloat16), wo_ref[...],
                           preferred_element_type=jnp.float32) + pvec[3:4]
        h2 = _layer_norm(h2 + attn_out, pvec[4:5], pvec[5:6])

        # ---- feed-forward (ReLU): lane-dense chunks, fori_loop bounds live set ----
        h2_bf = h2.astype(jnp.bfloat16)

        def ffn_body(c, ff):
            lo = pl.multiple_of(c * dff_chunk, dff_chunk)
            a = jnp.dot(h2_bf, w1_ref[:, pl.ds(lo, dff_chunk)],
                        preferred_element_type=jnp.float32) \
                + b1_ref[:, pl.ds(lo, dff_chunk)]
            a = jnp.maximum(a, 0.0).astype(jnp.bfloat16)
            # w2 is stored lane-dense as (D, dff); contract over the dff chunk
            # (NT matmul: rhs contracting dim = 1, same as pl.dot trans_b=True).
            return ff + lax.dot_general(
                a, w2_ref[:, pl.ds(lo, dff_chunk)],
                dimension_numbers=(((1,), (1,)), ((), ())),
                preferred_element_type=jnp.float32)

        ff = lax.fori_loop(0, n_chunks, ffn_body, jnp.zeros((BS, D), jnp.float32))
        h2 = _layer_norm(h2 + ff + pvec[6:7], pvec[7:8], pvec[8:9])
        h_ref[...] = h2

        # ---- epilogue (last grid step): mean over seq, classifier, softmax ----
        @pl.when(l == num_layers - 1)
        def _():
            pooled = jnp.mean(h2.reshape(B, S, D), axis=1)           # (B, D)
            logits = jnp.dot(pooled.astype(jnp.bfloat16), wfc_ref[...],
                             preferred_element_type=jnp.float32) + bfc_ref[...]
            out_ref[...] = _softmax_last(logits)

    return kernel


def transformer_classifier(x, params, *, num_heads, num_layers):
    B, S, F = x.shape
    D = params["w_in"].shape[1]
    dff = params["w1"].shape[2]
    C = params["w_fc"].shape[1]
    seg = params["wqkv"].shape[2] // 3
    H = num_heads
    L = num_layers
    BS = B * S
    dff_chunk = min(1024, dff)
    assert dff % dff_chunk == 0

    kernel = make_kernel(B, S, F, D, H, L, dff, C, dff_chunk, seg)

    args = (x, params["pe"][:S], params["w_in"], params["b_in"],
            params["wqkv"], params["wo"], params["w1"], params["w2"],
            params["pvec"], params["b1"],
            params["w_fc"], params["b_fc"], params["hmask"], params["hmask_t"])

    def whole(shape):
        return pl.BlockSpec(shape, lambda l: (0,) * len(shape))

    def per_layer(shape):
        # leading L dim is squeezed; layer `l` weights stream in per grid step
        return pl.BlockSpec((None,) + shape, lambda l: (l,) + (0,) * len(shape))

    in_specs = [
        whole((B, S, F)), whole((S, D)), whole((F, D)), whole((1, D)),
        per_layer((D, 3 * seg)),        # fused qkv weights (q-scale folded in)
        per_layer((D, D)),              # wo
        per_layer((D, dff)),            # w1 (lane-dense)
        per_layer((D, dff)),            # w2 (lane-dense, pre-transposed)
        per_layer((9, D)),              # packed bq,bk,bv,bo,ln1w,ln1b,b2,ln2w,ln2b
        per_layer((1, dff)),            # b1
        whole((D, C)), whole((1, C)),   # classifier
        whole((D, H)), whole((H, D)),   # head masks (bf16 0/1)
    ]

    flops = (
        2 * BS * F * D
        + L * (2 * BS * D * 3 * seg            # fused qkv projection
               + 2 * BS * D * D                # output projection
               + 4 * (B * B * S) * D * H       # head-sum + prob-expand matmuls
               + 4 * BS * D * dff              # two FFN matmuls
               + 8 * B * B * S * D             # attention elementwise work
               + 10 * BS * D)                  # layernorm / residual work
        + 2 * B * D * C
    )
    transcendentals = L * (B * B * S * H + 2 * BS) + B * C
    bytes_accessed = int(sum(int(a.size) * a.dtype.itemsize for a in args) + B * C * 4)
    cost = pl.CostEstimate(flops=int(flops), transcendentals=int(transcendentals),
                           bytes_accessed=bytes_accessed)

    return pl.pallas_call(
        kernel,
        out_shape=jax.ShapeDtypeStruct((B, C), jnp.float32),
        grid_spec=pltpu.PrefetchScalarGridSpec(
            num_scalar_prefetch=0,
            grid=(L,),
            in_specs=in_specs,
            out_specs=pl.BlockSpec((B, C), lambda l: (0, 0)),
            scratch_shapes=[pltpu.VMEM((BS, D), jnp.float32)],
        ),
        compiler_params=pltpu.CompilerParams(
            dimension_semantics=("arbitrary",)),
        cost_estimate=cost,
    )(*args)


def init_params(key, F, D, H, num_layers, dff, C, max_seq):
    """Raw (reference-layout) parameters, all f32.  Weights are quantized to the
    bf16 grid so the bf16-MXU kernel and the f32 reference share exact values."""
    L = num_layers
    ks = jax.random.split(key, 16)

    def w(k, shape, scale=0.05):
        v = scale * jax.random.normal(k, shape, dtype=jnp.float32)
        return v.astype(jnp.bfloat16).astype(jnp.float32)

    def b(k, shape, scale=0.05):
        return scale * jax.random.normal(k, shape, dtype=jnp.float32)

    # sinusoidal positional encoding (matches the PyTorch code)
    pos = jnp.arange(max_seq, dtype=jnp.float32)[:, None]
    div = jnp.exp(jnp.arange(0, D, 2, dtype=jnp.float32)
                  * (-jnp.log(jnp.float32(10000.0)) / D))
    pe = jnp.zeros((max_seq, D), jnp.float32)
    pe = pe.at[:, 0::2].set(jnp.sin(pos * div))
    pe = pe.at[:, 1::2].set(jnp.cos(pos * div))

    return dict(
        pe=pe,
        w_in=w(ks[0], (F, D)), b_in=b(ks[1], (D,)),
        wq=w(ks[2], (L, D, D)), bq=b(ks[3], (L, D)),
        wk=w(ks[4], (L, D, D)), bk=b(ks[5], (L, D)),
        wv=w(ks[6], (L, D, D)), bv=b(ks[7], (L, D)),
        wo=w(ks[8], (L, D, D)), bo=b(ks[9], (L, D)),
        ln1w=jnp.ones((L, D), jnp.float32), ln1b=jnp.zeros((L, D), jnp.float32),
        w1=w(ks[10], (L, D, dff)), b1=b(ks[11], (L, dff)),
        w2=w(ks[12], (L, dff, D)), b2=b(ks[13], (L, D)),
        ln2w=jnp.ones((L, D), jnp.float32), ln2b=jnp.zeros((L, D), jnp.float32),
        w_fc=w(ks[14], (D, C)), b_fc=b(ks[15], (C,)),
    )


def pack_params(raw, *, num_heads):
    """Kernel-layout parameters: fused/aligned QKV, lane-dense w2, packed rows,
    bf16 for everything that feeds the MXU, f32 for everything on the VPU."""
    L, D, _ = raw["wq"].shape
    H = num_heads
    Dh = D // H
    scale = 1.0 / math.sqrt(Dh)

    # Each Q/K/V segment starts on a 128-lane boundary so the in-kernel split is
    # a tile-aligned slice; 1/sqrt(Dh) folded into the Q weights/bias.
    seg = D if D % 128 == 0 else ((D + 127) // 128) * 128
    wqkv = jnp.zeros((L, D, 3 * seg), jnp.float32)
    wqkv = wqkv.at[:, :, 0:D].set(raw["wq"] * scale)
    wqkv = wqkv.at[:, :, seg:seg + D].set(raw["wk"])
    wqkv = wqkv.at[:, :, 2 * seg:2 * seg + D].set(raw["wv"])

    # All per-layer (D,)-sized params packed into one (L, 9, D) array.
    pvec = jnp.stack([raw["bq"] * scale, raw["bk"], raw["bv"], raw["bo"],
                      raw["ln1w"], raw["ln1b"], raw["b2"],
                      raw["ln2w"], raw["ln2b"]], axis=1)

    # head-membership mask: exact 0/1, so bf16 is lossless.
    hmask = (jnp.arange(D)[:, None] // Dh == jnp.arange(H)[None, :]).astype(jnp.bfloat16)

    return dict(
        pe=raw["pe"],
        w_in=raw["w_in"].astype(jnp.bfloat16), b_in=raw["b_in"][None, :],
        wqkv=wqkv.astype(jnp.bfloat16),
        wo=raw["wo"].astype(jnp.bfloat16),
        w1=raw["w1"].astype(jnp.bfloat16),
        w2=jnp.swapaxes(raw["w2"], 1, 2).astype(jnp.bfloat16),  # lane-dense (L, D, dff)
        pvec=pvec,
        b1=raw["b1"][:, None, :],
        w_fc=raw["w_fc"].astype(jnp.bfloat16), b_fc=raw["b_fc"][None, :],
        hmask=hmask, hmask_t=hmask.T,
    )


def ref_forward(x, raw, *, num_heads, num_layers):
    """Pure-JAX f32 reference of the PyTorch module (eval mode)."""
    B, S, _ = x.shape
    D = raw["w_in"].shape[1]
    H = num_heads
    Dh = D // H
    h = x @ raw["w_in"] + raw["b_in"]
    h = h + raw["pe"][:S][None, :, :]
    for l in range(num_layers):
        q = (h @ raw["wq"][l] + raw["bq"][l]).reshape(B, S, H, Dh)
        k = (h @ raw["wk"][l] + raw["bk"][l]).reshape(B, S, H, Dh)
        v = (h @ raw["wv"][l] + raw["bv"][l]).reshape(B, S, H, Dh)
        # batch_first=False: attention runs over dim 0 (our batch axis) for
        # every (seq position, head).
        sc = jnp.einsum('ishd,jshd->ijsh', q, k) / math.sqrt(Dh)
        p = jax.nn.softmax(sc, axis=1)
        attn = jnp.einsum('ijsh,jshd->ishd', p, v).reshape(B, S, D)
        attn = attn @ raw["wo"][l] + raw["bo"][l]
        h = _layer_norm(h + attn, raw["ln1w"][l], raw["ln1b"][l])
        ff = jnp.maximum(h @ raw["w1"][l] + raw["b1"][l], 0.0) @ raw["w2"][l] + raw["b2"][l]
        h = _layer_norm(h + ff, raw["ln2w"][l], raw["ln2b"][l])
    pooled = h.mean(axis=1)
    logits = pooled @ raw["w_fc"] + raw["b_fc"]
    return jax.nn.softmax(logits, axis=-1)


if __name__ == "__main__":
    # small shapes consistent with the module
    B, S = 2, 8                      # batch, sequence length
    INPUT_FEATURE_SIZE = 16
    NUM_CLASSES = 8
    NUM_HEADS = 4
    NUM_ENCODER_LAYERS = 2
    D_MODEL = 32                     # the module's `dim_feedforward` arg (= d_model)
    MAX_SEQ_LEN = 8
    FFN_INNER = 2048                 # PyTorch TransformerEncoderLayer default

    key = jax.random.PRNGKey(0)
    kx, kp = jax.random.split(key)
    x = jax.random.normal(kx, (B, S, INPUT_FEATURE_SIZE), dtype=jnp.float32)
    raw = init_params(kp, INPUT_FEATURE_SIZE, D_MODEL, NUM_HEADS,
                      NUM_ENCODER_LAYERS, FFN_INNER, NUM_CLASSES, MAX_SEQ_LEN)
    packed = pack_params(raw, num_heads=NUM_HEADS)

    out = transformer_classifier(x, packed,
                                 num_heads=NUM_HEADS,
                                 num_layers=NUM_ENCODER_LAYERS)
    out = jax.block_until_ready(out)

    ref = ref_forward(x, raw, num_heads=NUM_HEADS, num_layers=NUM_ENCODER_LAYERS)

    assert out.shape == (B, NUM_CLASSES)
    assert bool(jnp.allclose(out.sum(axis=1), 1.0, atol=1e-4))
    err = float(jnp.max(jnp.abs(out - ref)))
    assert err < 2e-2, f"max |kernel - reference| = {err}"
    print("KERNEL_OK")
</pallas_src>

<mosaic_0001>
module attributes {stable_mosaic.version = 11 : i64} {
  func.func @kernel(%arg0: i32, %arg1: memref<2x8x16xf32, #tpu.memory_space<vmem>>, %arg2: memref<8x32xf32, #tpu.memory_space<vmem>>, %arg3: memref<16x32xbf16, #tpu.memory_space<vmem>>, %arg4: memref<1x32xf32, #tpu.memory_space<vmem>>, %arg5: memref<1x32x384xbf16, #tpu.memory_space<vmem>>, %arg6: memref<1x32x32xbf16, #tpu.memory_space<vmem>>, %arg7: memref<1x32x2048xbf16, #tpu.memory_space<vmem>>, %arg8: memref<1x32x2048xbf16, #tpu.memory_space<vmem>>, %arg9: memref<1x9x32xf32, #tpu.memory_space<vmem>>, %arg10: memref<1x1x2048xf32, #tpu.memory_space<vmem>>, %arg11: memref<32x8xbf16, #tpu.memory_space<vmem>>, %arg12: memref<1x8xf32, #tpu.memory_space<vmem>>, %arg13: memref<32x4xbf16, #tpu.memory_space<vmem>>, %arg14: memref<4x32xbf16, #tpu.memory_space<vmem>>, %arg15: memref<2x8xf32, #tpu.memory_space<vmem>>, %arg16: memref<16x32xf32, #tpu.memory_space<vmem>>) attributes {dimension_semantics = [#tpu.dimension_semantics<arbitrary>], iteration_bounds = array<i64: 2>, scalar_prefetch = 0 : i64, scratch_operands = 1 : i64, tpu.core_type = #tpu.core_type<tc>, window_params = [{pipeline_mode = #tpu.pipeline_mode<synchronous>, transform_indices = @transform_0, window_bounds = array<i64: 2, 8, 16>}, {pipeline_mode = #tpu.pipeline_mode<synchronous>, transform_indices = @transform_1, window_bounds = array<i64: 8, 32>}, {pipeline_mode = #tpu.pipeline_mode<synchronous>, transform_indices = @transform_2, window_bounds = array<i64: 16, 32>}, {pipeline_mode = #tpu.pipeline_mode<synchronous>, transform_indices = @transform_3, window_bounds = array<i64: 1, 32>}, {transform_indices = @transform_4, window_bounds = array<i64: 1, 32, 384>}, {transform_indices = @transform_5, window_bounds = array<i64: 1, 32, 32>}, {transform_indices = @transform_6, window_bounds = array<i64: 1, 32, 2048>}, {transform_indices = @transform_7, window_bounds = array<i64: 1, 32, 2048>}, {transform_indices = @transform_8, window_bounds = array<i64: 1, 9, 32>}, {transform_indices = @transform_9, window_bounds = array<i64: 1, 1, 2048>}, {pipeline_mode = #tpu.pipeline_mode<synchronous>, transform_indices = @transform_10, window_bounds = array<i64: 32, 8>}, {pipeline_mode = #tpu.pipeline_mode<synchronous>, transform_indices = @transform_11, window_bounds = array<i64: 1, 8>}, {pipeline_mode = #tpu.pipeline_mode<synchronous>, transform_indices = @transform_12, window_bounds = array<i64: 32, 4>}, {pipeline_mode = #tpu.pipeline_mode<synchronous>, transform_indices = @transform_13, window_bounds = array<i64: 4, 32>}, {pipeline_mode = #tpu.pipeline_mode<synchronous>, transform_indices = @transform_14, window_bounds = array<i64: 2, 8>}]} {
    %c0_i32 = arith.constant 0 : i32
    %0 = arith.cmpi eq, %arg0, %c0_i32 : i32
    %1 = arith.extui %0 : i1 to i32
    %c0_i32_0 = arith.constant 0 : i32
    %2 = arith.cmpi ne, %1, %c0_i32_0 : i32
    scf.if %2 {
      %c0_38 = arith.constant 0 : index
      %c0_39 = arith.constant 0 : index
      %c0_40 = arith.constant 0 : index
      %122 = vector.load %arg1[%c0_38, %c0_39, %c0_40] : memref<2x8x16xf32, #tpu.memory_space<vmem>>, vector<2x8x16xf32>
      %123 = vector.shape_cast %122 : vector<2x8x16xf32> to vector<16x16xf32>
      %124 = arith.truncf %123 : vector<16x16xf32> to vector<16x16xbf16>
      %c0_41 = arith.constant 0 : index
      %c0_42 = arith.constant 0 : index
      %125 = vector.load %arg3[%c0_41, %c0_42] : memref<16x32xbf16, #tpu.memory_space<vmem>>, vector<16x32xbf16>
      %cst_43 = arith.constant dense<0.000000e+00> : vector<16x32xf32>
      %126 = tpu.matmul %124, %125, %cst_43 {dimension_numbers = #tpu.dot_dimension_numbers<[1], [0], [0], [1], [0, 0, 1, 1], [], []>} : vector<16x16xbf16>, vector<16x32xbf16>, vector<16x32xf32> -> vector<16x32xf32>
      %c0_44 = arith.constant 0 : index
      %c0_45 = arith.constant 0 : index
      %127 = vector.load %arg4[%c0_44, %c0_45] : memref<1x32xf32, #tpu.memory_space<vmem>>, vector<1x32xf32>
      %128 = vector.broadcast %127 : vector<1x32xf32> to vector<16x32xf32>
      %129 = arith.addf %126, %128 : vector<16x32xf32>
      %130 = vector.shape_cast %129 : vector<16x32xf32> to vector<2x8x32xf32>
      %c0_46 = arith.constant 0 : index
      %c0_47 = arith.constant 0 : index
      %131 = vector.load %arg2[%c0_46, %c0_47] : memref<8x32xf32, #tpu.memory_space<vmem>>, vector<8x32xf32>
      %132 = vector.shape_cast %131 : vector<8x32xf32> to vector<1x8x32xf32>
      %133 = vector.broadcast %132 : vector<1x8x32xf32> to vector<2x8x32xf32>
      %134 = arith.addf %130, %133 : vector<2x8x32xf32>
      %135 = vector.shape_cast %134 : vector<2x8x32xf32> to vector<16x32xf32>
      %c0_48 = arith.constant 0 : index
      %c0_49 = arith.constant 0 : index
      %136 = vector.load %arg16[%c0_48, %c0_49] : memref<16x32xf32, #tpu.memory_space<vmem>>, vector<16x32xf32>
      tpu.vector_store %arg16[%c0_48, %c0_49], %135 {strides = array<i32>} : memref<16x32xf32, #tpu.memory_space<vmem>>, vector<16x32xf32>,
    } else {
    }
    %c0 = arith.constant 0 : index
    %c0_1 = arith.constant 0 : index
    %c0_2 = arith.constant 0 : index
    %3 = vector.load %arg9[%c0, %c0_1, %c0_2] : memref<1x9x32xf32, #tpu.memory_space<vmem>>, vector<1x9x32xf32>
    %4 = vector.shape_cast %3 : vector<1x9x32xf32> to vector<9x32xf32>
    %c0_3 = arith.constant 0 : index
    %c0_4 = arith.constant 0 : index
    %5 = vector.load %arg16[%c0_3, %c0_4] : memref<16x32xf32, #tpu.memory_space<vmem>>, vector<16x32xf32>
    %6 = arith.truncf %5 : vector<16x32xf32> to vector<16x32xbf16>
    %c0_5 = arith.constant 0 : index
    %c0_6 = arith.constant 0 : index
    %c0_7 = arith.constant 0 : index
    %7 = vector.load %arg5[%c0_5, %c0_6, %c0_7] : memref<1x32x384xbf16, #tpu.memory_space<vmem>>, vector<1x32x384xbf16>
    %8 = vector.shape_cast %7 : vector<1x32x384xbf16> to vector<32x384xbf16>
    %cst = arith.constant dense<0.000000e+00> : vector<16x384xf32>
    %9 = tpu.matmul %6, %8, %cst {dimension_numbers = #tpu.dot_dimension_numbers<[1], [0], [0], [1], [0, 0, 1, 1], [], []>} : vector<16x32xbf16>, vector<32x384xbf16>, vector<16x384xf32> -> vector<16x384xf32>
    %10 = vector.extract_strided_slice %9 {offsets = [0, 0], sizes = [16, 32], strides = [1, 1]} : vector<16x384xf32> to vector<16x32xf32>
    %11 = vector.extract_strided_slice %4 {offsets = [0, 0], sizes = [1, 32], strides = [1, 1]} : vector<9x32xf32> to vector<1x32xf32>
    %12 = vector.broadcast %11 : vector<1x32xf32> to vector<16x32xf32>
    %13 = arith.addf %10, %12 : vector<16x32xf32>
    %14 = vector.shape_cast %13 : vector<16x32xf32> to vector<2x8x32xf32>
    %15 = vector.extract_strided_slice %9 {offsets = [0, 128], sizes = [16, 32], strides = [1, 1]} : vector<16x384xf32> to vector<16x32xf32>
    %16 = vector.extract_strided_slice %4 {offsets = [1, 0], sizes = [1, 32], strides = [1, 1]} : vector<9x32xf32> to vector<1x32xf32>
    %17 = vector.broadcast %16 : vector<1x32xf32> to vector<16x32xf32>
    %18 = arith.addf %15, %17 : vector<16x32xf32>
    %19 = vector.shape_cast %18 : vector<16x32xf32> to vector<2x8x32xf32>
    %20 = vector.extract_strided_slice %9 {offsets = [0, 256], sizes = [16, 32], strides = [1, 1]} : vector<16x384xf32> to vector<16x32xf32>
    %21 = vector.extract_strided_slice %4 {offsets = [2, 0], sizes = [1, 32], strides = [1, 1]} : vector<9x32xf32> to vector<1x32xf32>
    %22 = vector.broadcast %21 : vector<1x32xf32> to vector<16x32xf32>
    %23 = arith.addf %20, %22 : vector<16x32xf32>
    %24 = vector.shape_cast %23 : vector<16x32xf32> to vector<2x8x32xf32>
    %25 = vector.shape_cast %14 : vector<2x8x32xf32> to vector<2x1x8x32xf32>
    %26 = vector.shape_cast %19 : vector<2x8x32xf32> to vector<1x2x8x32xf32>
    %27 = vector.broadcast %25 : vector<2x1x8x32xf32> to vector<2x2x8x32xf32>
    %28 = vector.broadcast %26 : vector<1x2x8x32xf32> to vector<2x2x8x32xf32>
    %29 = arith.mulf %27, %28 : vector<2x2x8x32xf32>
    %30 = arith.truncf %29 : vector<2x2x8x32xf32> to vector<2x2x8x32xbf16>
    %31 = vector.shape_cast %30 : vector<2x2x8x32xbf16> to vector<32x32xbf16>
    %c0_8 = arith.constant 0 : index
    %c0_9 = arith.constant 0 : index
    %32 = vector.load %arg13[%c0_8, %c0_9] : memref<32x4xbf16, #tpu.memory_space<vmem>>, vector<32x4xbf16>
    %cst_10 = arith.constant dense<0.000000e+00> : vector<32x4xf32>
    %33 = tpu.matmul %31, %32, %cst_10 {dimension_numbers = #tpu.dot_dimension_numbers<[1], [0], [0], [1], [0, 0, 1, 1], [], []>} : vector<32x32xbf16>, vector<32x4xbf16>, vector<32x4xf32> -> vector<32x4xf32>
    %34 = vector.shape_cast %33 : vector<32x4xf32> to vector<2x2x8x4xf32>
    %cst_11 = arith.constant dense<0xFF800000> : vector<2x8x4xf32>
    %35 = vector.multi_reduction <maximumf>, %34, %cst_11 [1] : vector<2x2x8x4xf32> to vector<2x8x4xf32>
    %36 = vector.shape_cast %35 : vector<2x8x4xf32> to vector<2x1x8x4xf32>
    %37 = vector.broadcast %36 : vector<2x1x8x4xf32> to vector<2x2x8x4xf32>
    %38 = arith.subf %34, %37 : vector<2x2x8x4xf32>
    %39 = math.exp %38 : vector<2x2x8x4xf32>
    %cst_12 = arith.constant dense<0.000000e+00> : vector<2x8x4xf32>
    %40 = vector.multi_reduction <add>, %39, %cst_12 [1] : vector<2x2x8x4xf32> to vector<2x8x4xf32>
    %41 = vector.shape_cast %40 : vector<2x8x4xf32> to vector<2x1x8x4xf32>
    %42 = vector.broadcast %41 : vector<2x1x8x4xf32> to vector<2x2x8x4xf32>
    %43 = arith.divf %39, %42 : vector<2x2x8x4xf32>
    %44 = arith.truncf %43 : vector<2x2x8x4xf32> to vector<2x2x8x4xbf16>
    %45 = vector.shape_cast %44 : vector<2x2x8x4xbf16> to vector<32x4xbf16>
    %c0_13 = arith.constant 0 : index
    %c0_14 = arith.constant 0 : index
    %46 = vector.load %arg14[%c0_13, %c0_14] : memref<4x32xbf16, #tpu.memory_space<vmem>>, vector<4x32xbf16>
    %cst_15 = arith.constant dense<0.000000e+00> : vector<32x32xf32>
    %47 = tpu.matmul %45, %46, %cst_15 {dimension_numbers = #tpu.dot_dimension_numbers<[1], [0], [0], [1], [0, 0, 1, 1], [], []>} : vector<32x4xbf16>, vector<4x32xbf16>, vector<32x32xf32> -> vector<32x32xf32>
    %48 = vector.shape_cast %47 : vector<32x32xf32> to vector<2x2x8x32xf32>
    %49 = vector.shape_cast %24 : vector<2x8x32xf32> to vector<1x2x8x32xf32>
    %50 = vector.broadcast %49 : vector<1x2x8x32xf32> to vector<2x2x8x32xf32>
    %51 = arith.mulf %48, %50 : vector<2x2x8x32xf32>
    %cst_16 = arith.constant dense<0.000000e+00> : vector<2x8x32xf32>
    %52 = vector.multi_reduction <add>, %51, %cst_16 [1] : vector<2x2x8x32xf32> to vector<2x8x32xf32>
    %53 = vector.shape_cast %52 : vector<2x8x32xf32> to vector<16x32xf32>
    %54 = arith.truncf %53 : vector<16x32xf32> to vector<16x32xbf16>
    %c0_17 = arith.constant 0 : index
    %c0_18 = arith.constant 0 : index
    %c0_19 = arith.constant 0 : index
    %55 = vector.load %arg6[%c0_17, %c0_18, %c0_19] : memref<1x32x32xbf16, #tpu.memory_space<vmem>>, vector<1x32x32xbf16>
    %56 = vector.shape_cast %55 : vector<1x32x32xbf16> to vector<32x32xbf16>
    %cst_20 = arith.constant dense<0.000000e+00> : vector<16x32xf32>
    %57 = tpu.matmul %54, %56, %cst_20 {dimension_numbers = #tpu.dot_dimension_numbers<[1], [0], [0], [1], [0, 0, 1, 1], [], []>} : vector<16x32xbf16>, vector<32x32xbf16>, vector<16x32xf32> -> vector<16x32xf32>
    %58 = vector.extract_strided_slice %4 {offsets = [3, 0], sizes = [1, 32], strides = [1, 1]} : vector<9x32xf32> to vector<1x32xf32>
    %59 = vector.broadcast %58 : vector<1x32xf32> to vector<16x32xf32>
    %60 = arith.addf %57, %59 : vector<16x32xf32>
    %61 = arith.addf %5, %60 : vector<16x32xf32>
    %62 = vector.extract_strided_slice %4 {offsets = [4, 0], sizes = [1, 32], strides = [1, 1]} : vector<9x32xf32> to vector<1x32xf32>
    %63 = vector.extract_strided_slice %4 {offsets = [5, 0], sizes = [1, 32], strides = [1, 1]} : vector<9x32xf32> to vector<1x32xf32>
    %cst_21 = arith.constant dense<0.000000e+00> : vector<16xf32>
    %64 = vector.multi_reduction <add>, %61, %cst_21 [1] : vector<16x32xf32> to vector<16xf32>
    %65 = vector.shape_cast %64 : vector<16xf32> to vector<16x1xf32>
    %cst_22 = arith.constant 3.200000e+01 : f32
    %66 = vector.broadcast %cst_22 : f32 to vector<16x1xf32>
    %67 = arith.divf %65, %66 : vector<16x1xf32>
    %68 = vector.broadcast %67 : vector<16x1xf32> to vector<16x32xf32>
    %69 = arith.subf %61, %68 : vector<16x32xf32>
    %70 = arith.mulf %69, %69 : vector<16x32xf32>
    %cst_23 = arith.constant dense<0.000000e+00> : vector<16xf32>
    %71 = vector.multi_reduction <add>, %70, %cst_23 [1] : vector<16x32xf32> to vector<16xf32>
    %72 = vector.shape_cast %71 : vector<16xf32> to vector<16x1xf32>
    %cst_24 = arith.constant 3.200000e+01 : f32
    %73 = vector.broadcast %cst_24 : f32 to vector<16x1xf32>
    %74 = arith.divf %72, %73 : vector<16x1xf32>
    %75 = vector.broadcast %67 : vector<16x1xf32> to vector<16x32xf32>
    %76 = arith.subf %61, %75 : vector<16x32xf32>
    %cst_25 = arith.constant 9.99999974E-6 : f32
    %77 = vector.broadcast %cst_25 : f32 to vector<16x1xf32>
    %78 = arith.addf %74, %77 : vector<16x1xf32>
    %79 = math.rsqrt %78 : vector<16x1xf32>
    %80 = vector.broadcast %79 : vector<16x1xf32> to vector<16x32xf32>
    %81 = arith.mulf %76, %80 : vector<16x32xf32>
    %82 = vector.broadcast %62 : vector<1x32xf32> to vector<16x32xf32>
    %83 = arith.mulf %81, %82 : vector<16x32xf32>
    %84 = vector.broadcast %63 : vector<1x32xf32> to vector<16x32xf32>
    %85 = arith.addf %83, %84 : vector<16x32xf32>
    %86 = arith.truncf %85 : vector<16x32xf32> to vector<16x32xbf16>
    %cst_26 = arith.constant 0.000000e+00 : f32
    %87 = vector.broadcast %cst_26 : f32 to vector<16x32xf32>
    %c0_i32_27 = arith.constant 0 : i32
    %c2_i32 = arith.constant 2 : i32
    %88 = arith.addi %c0_i32_27, %c2_i32 : i32
    %c1_i32 = arith.constant 1 : i32
    %89 = scf.for %arg17 = %c0_i32_27 to %88 step %c1_i32 iter_args(%arg18 = %87) -> (vector<16x32xf32>)  : i32 {
      %c1024_i32 = arith.constant 1024 : i32
      %122 = arith.muli %arg17, %c1024_i32 : i32
      %123 = tpu.assume_multiple %122, 1024 : i32
      %c0_38 = arith.constant 0 : index
      %c0_39 = arith.constant 0 : index
      %124 = arith.index_cast %123 : i32 to index
      %125 = vector.load %arg7[%c0_38, %c0_39, %124] : memref<1x32x2048xbf16, #tpu.memory_space<vmem>>, vector<1x32x1024xbf16>
      %126 = vector.shape_cast %125 : vector<1x32x1024xbf16> to vector<32x1024xbf16>
      %cst_40 = arith.constant dense<0.000000e+00> : vector<16x1024xf32>
      %127 = tpu.matmul %86, %126, %cst_40 {dimension_numbers = #tpu.dot_dimension_numbers<[1], [0], [0], [1], [0, 0, 1, 1], [], []>} : vector<16x32xbf16>, vector<32x1024xbf16>, vector<16x1024xf32> -> vector<16x1024xf32>
      %c0_41 = arith.constant 0 : index
      %c0_42 = arith.constant 0 : index
      %128 = arith.index_cast %123 : i32 to index
      %129 = vector.load %arg10[%c0_41, %c0_42, %128] : memref<1x1x2048xf32, #tpu.memory_space<vmem>>, vector<1x1x1024xf32>
      %130 = vector.shape_cast %129 : vector<1x1x1024xf32> to vector<1x1024xf32>
      %131 = vector.broadcast %130 : vector<1x1024xf32> to vector<16x1024xf32>
      %132 = arith.addf %127, %131 : vector<16x1024xf32>
      %cst_43 = arith.constant 0.000000e+00 : f32
      %133 = vector.broadcast %cst_43 : f32 to vector<16x1024xf32>
      %134 = arith.maximumf %132, %133 : vector<16x1024xf32>
      %135 = arith.truncf %134 : vector<16x1024xf32> to vector<16x1024xbf16>
      %c0_44 = arith.constant 0 : index
      %c0_45 = arith.constant 0 : index
      %136 = arith.index_cast %123 : i32 to index
      %137 = vector.load %arg8[%c0_44, %c0_45, %136] : memref<1x32x2048xbf16, #tpu.memory_space<vmem>>, vector<1x32x1024xbf16>
      %138 = vector.shape_cast %137 : vector<1x32x1024xbf16> to vector<32x1024xbf16>
      %cst_46 = arith.constant dense<0.000000e+00> : vector<16x32xf32>
      %139 = tpu.matmul %135, %138, %cst_46 {dimension_numbers = #tpu.dot_dimension_numbers<[1], [1], [0], [0], [0, 0, 1, 0], [], []>} : vector<16x1024xbf16>, vector<32x1024xbf16>, vector<16x32xf32> -> vector<16x32xf32>
      %140 = arith.addf %arg18, %139 : vector<16x32xf32>
      scf.yield %140 : vector<16x32xf32>
    }
    %c2_i32_28 = arith.constant 2 : i32
    %90 = arith.addf %85, %89 : vector<16x32xf32>
    %91 = vector.extract_strided_slice %4 {offsets = [6, 0], sizes = [1, 32], strides = [1, 1]} : vector<9x32xf32> to vector<1x32xf32>
    %92 = vector.broadcast %91 : vector<1x32xf32> to vector<16x32xf32>
    %93 = arith.addf %90, %92 : vector<16x32xf32>
    %94 = vector.extract_strided_slice %4 {offsets = [7, 0], sizes = [1, 32], strides = [1, 1]} : vector<9x32xf32> to vector<1x32xf32>
    %95 = vector.extract_strided_slice %4 {offsets = [8, 0], sizes = [1, 32], strides = [1, 1]} : vector<9x32xf32> to vector<1x32xf32>
    %cst_29 = arith.constant dense<0.000000e+00> : vector<16xf32>
    %96 = vector.multi_reduction <add>, %93, %cst_29 [1] : vector<16x32xf32> to vector<16xf32>
    %97 = vector.shape_cast %96 : vector<16xf32> to vector<16x1xf32>
    %cst_30 = arith.constant 3.200000e+01 : f32
    %98 = vector.broadcast %cst_30 : f32 to vector<16x1xf32>
    %99 = arith.divf %97, %98 : vector<16x1xf32>
    %100 = vector.broadcast %99 : vector<16x1xf32> to vector<16x32xf32>
    %101 = arith.subf %93, %100 : vector<16x32xf32>
    %102 = arith.mulf %101, %101 : vector<16x32xf32>
    %cst_31 = arith.constant dense<0.000000e+00> : vector<16xf32>
    %103 = vector.multi_reduction <add>, %102, %cst_31 [1] : vector<16x32xf32> to vector<16xf32>
    %104 = vector.shape_cast %103 : vector<16xf32> to vector<16x1xf32>
    %cst_32 = arith.constant 3.200000e+01 : f32
    %105 = vector.broadcast %cst_32 : f32 to vector<16x1xf32>
    %106 = arith.divf %104, %105 : vector<16x1xf32>
    %107 = vector.broadcast %99 : vector<16x1xf32> to vector<16x32xf32>
    %108 = arith.subf %93, %107 : vector<16x32xf32>
    %cst_33 = arith.constant 9.99999974E-6 : f32
    %109 = vector.broadcast %cst_33 : f32 to vector<16x1xf32>
    %110 = arith.addf %106, %109 : vector<16x1xf32>
    %111 = math.rsqrt %110 : vector<16x1xf32>
    %112 = vector.broadcast %111 : vector<16x1xf32> to vector<16x32xf32>
    %113 = arith.mulf %108, %112 : vector<16x32xf32>
    %114 = vector.broadcast %94 : vector<1x32xf32> to vector<16x32xf32>
    %115 = arith.mulf %113, %114 : vector<16x32xf32>
    %116 = vector.broadcast %95 : vector<1x32xf32> to vector<16x32xf32>
    %117 = arith.addf %115, %116 : vector<16x32xf32>
    %c0_34 = arith.constant 0 : index
    %c0_35 = arith.constant 0 : index
    %118 = vector.load %arg16[%c0_34, %c0_35] : memref<16x32xf32, #tpu.memory_space<vmem>>, vector<16x32xf32>
    tpu.vector_store %arg16[%c0_34, %c0_35], %117 {strides = array<i32>} : memref<16x32xf32, #tpu.memory_space<vmem>>, vector<16x32xf32>,
    %c1_i32_36 = arith.constant 1 : i32
    %119 = arith.cmpi eq, %arg0, %c1_i32_36 : i32
    %120 = arith.extui %119 : i1 to i32
    %c0_i32_37 = arith.constant 0 : i32
    %121 = arith.cmpi ne, %120, %c0_i32_37 : i32
    scf.if %121 {
      %122 = vector.shape_cast %117 : vector<16x32xf32> to vector<2x8x32xf32>
      %cst_38 = arith.constant dense<0.000000e+00> : vector<2x32xf32>
      %123 = vector.multi_reduction <add>, %122, %cst_38 [1] : vector<2x8x32xf32> to vector<2x32xf32>
      %cst_39 = arith.constant 8.000000e+00 : f32
      %124 = vector.broadcast %cst_39 : f32 to vector<2x32xf32>
      %125 = arith.divf %123, %124 : vector<2x32xf32>
      %126 = arith.truncf %125 : vector<2x32xf32> to vector<2x32xbf16>
      %c0_40 = arith.constant 0 : index
      %c0_41 = arith.constant 0 : index
      %127 = vector.load %arg11[%c0_40, %c0_41] : memref<32x8xbf16, #tpu.memory_space<vmem>>, vector<32x8xbf16>
      %cst_42 = arith.constant dense<0.000000e+00> : vector<2x8xf32>
      %128 = tpu.matmul %126, %127, %cst_42 {dimension_numbers = #tpu.dot_dimension_numbers<[1], [0], [0], [1], [0, 0, 1, 1], [], []>} : vector<2x32xbf16>, vector<32x8xbf16>, vector<2x8xf32> -> vector<2x8xf32>
      %c0_43 = arith.constant 0 : index
      %c0_44 = arith.constant 0 : index
      %129 = vector.load %arg12[%c0_43, %c0_44] : memref<1x8xf32, #tpu.memory_space<vmem>>, vector<1x8xf32>
      %130 = vector.broadcast %129 : vector<1x8xf32> to vector<2x8xf32>
      %131 = arith.addf %128, %130 : vector<2x8xf32>
      %cst_45 = arith.constant dense<0xFF800000> : vector<2xf32>
      %132 = vector.multi_reduction <maximumf>, %131, %cst_45 [1] : vector<2x8xf32> to vector<2xf32>
      %133 = vector.shape_cast %132 : vector<2xf32> to vector<2x1xf32>
      %134 = vector.broadcast %133 : vector<2x1xf32> to vector<2x8xf32>
      %135 = arith.subf %131, %134 : vector<2x8xf32>
      %136 = math.exp %135 : vector<2x8xf32>
      %cst_46 = arith.constant dense<0.000000e+00> : vector<2xf32>
      %137 = vector.multi_reduction <add>, %136, %cst_46 [1] : vector<2x8xf32> to vector<2xf32>
      %138 = vector.shape_cast %137 : vector<2xf32> to vector<2x1xf32>
      %139 = vector.broadcast %138 : vector<2x1xf32> to vector<2x8xf32>
      %140 = arith.divf %136, %139 : vector<2x8xf32>
      %c0_47 = arith.constant 0 : index
      %c0_48 = arith.constant 0 : index
      %141 = vector.load %arg15[%c0_47, %c0_48] : memref<2x8xf32, #tpu.memory_space<vmem>>, vector<2x8xf32>
      tpu.vector_store %arg15[%c0_47, %c0_48], %140 {strides = array<i32>} : memref<2x8xf32, #tpu.memory_space<vmem>>, vector<2x8xf32>,
    } else {
    }
    return
  }
  func.func @transform_0(%arg0: i32) -> (i32, i32, i32) {
    %c0_i32 = arith.constant 0 : i32
    %c0_i32_0 = arith.constant 0 : i32
    %c0_i32_1 = arith.constant 0 : i32
    %c0_i32_2 = arith.constant 0 : i32
    return %c0_i32, %c0_i32_0, %c0_i32_1 : i32, i32, i32
  }
  func.func @transform_1(%arg0: i32) -> (i32, i32) {
    %c0_i32 = arith.constant 0 : i32
    %c0_i32_0 = arith.constant 0 : i32
    %c0_i32_1 = arith.constant 0 : i32
    return %c0_i32, %c0_i32_0 : i32, i32
  }
  func.func @transform_2(%arg0: i32) -> (i32, i32) {
    %c0_i32 = arith.constant 0 : i32
    %c0_i32_0 = arith.constant 0 : i32
    %c0_i32_1 = arith.constant 0 : i32
    return %c0_i32, %c0_i32_0 : i32, i32
  }
  func.func @transform_3(%arg0: i32) -> (i32, i32) {
    %c0_i32 = arith.constant 0 : i32
    %c0_i32_0 = arith.constant 0 : i32
    %c0_i32_1 = arith.constant 0 : i32
    return %c0_i32, %c0_i32_0 : i32, i32
  }
  func.func @transform_4(%arg0: i32) -> (i32, i32, i32) {
    %c0_i32 = arith.constant 0 : i32
    %c0_i32_0 = arith.constant 0 : i32
    %c0_i32_1 = arith.constant 0 : i32
    return %arg0, %c0_i32, %c0_i32_0 : i32, i32, i32
  }
  func.func @transform_5(%arg0: i32) -> (i32, i32, i32) {
    %c0_i32 = arith.constant 0 : i32
    %c0_i32_0 = arith.constant 0 : i32
    %c0_i32_1 = arith.constant 0 : i32
    return %arg0, %c0_i32, %c0_i32_0 : i32, i32, i32
  }
  func.func @transform_6(%arg0: i32) -> (i32, i32, i32) {
    %c0_i32 = arith.constant 0 : i32
    %c0_i32_0 = arith.constant 0 : i32
    %c0_i32_1 = arith.constant 0 : i32
    return %arg0, %c0_i32, %c0_i32_0 : i32, i32, i32
  }
  func.func @transform_7(%arg0: i32) -> (i32, i32, i32) {
    %c0_i32 = arith.constant 0 : i32
    %c0_i32_0 = arith.constant 0 : i32
    %c0_i32_1 = arith.constant 0 : i32
    return %arg0, %c0_i32, %c0_i32_0 : i32, i32, i32
  }
  func.func @transform_8(%arg0: i32) -> (i32, i32, i32) {
    %c0_i32 = arith.constant 0 : i32
    %c0_i32_0 = arith.constant 0 : i32
    %c0_i32_1 = arith.constant 0 : i32
    return %arg0, %c0_i32, %c0_i32_0 : i32, i32, i32
  }
  func.func @transform_9(%arg0: i32) -> (i32, i32, i32) {
    %c0_i32 = arith.constant 0 : i32
    %c0_i32_0 = arith.constant 0 : i32
    %c0_i32_1 = arith.constant 0 : i32
    return %arg0, %c0_i32, %c0_i32_0 : i32, i32, i32
  }
  func.func @transform_10(%arg0: i32) -> (i32, i32) {
    %c0_i32 = arith.constant 0 : i32
    %c0_i32_0 = arith.constant 0 : i32
    %c0_i32_1 = arith.constant 0 : i32
    return %c0_i32, %c0_i32_0 : i32, i32
  }
  func.func @transform_11(%arg0: i32) -> (i32, i32) {
    %c0_i32 = arith.constant 0 : i32
    %c0_i32_0 = arith.constant 0 : i32
    %c0_i32_1 = arith.constant 0 : i32
    return %c0_i32, %c0_i32_0 : i32, i32
  }
  func.func @transform_12(%arg0: i32) -> (i32, i32) {
    %c0_i32 = arith.constant 0 : i32
    %c0_i32_0 = arith.constant 0 : i32
    %c0_i32_1 = arith.constant 0 : i32
    return %c0_i32, %c0_i32_0 : i32, i32
  }
  func.func @transform_13(%arg0: i32) -> (i32, i32) {
    %c0_i32 = arith.constant 0 : i32
    %c0_i32_0 = arith.constant 0 : i32
    %c0_i32_1 = arith.constant 0 : i32
    return %c0_i32, %c0_i32_0 : i32, i32
  }
  func.func @transform_14(%arg0: i32) -> (i32, i32) {
    %c0_i32 = arith.constant 0 : i32
    %c0_i32_0 = arith.constant 0 : i32
    %c0_i32_1 = arith.constant 0 : i32
    return %c0_i32, %c0_i32_0 : i32, i32
  }
}

</mosaic_0001>

<bundles_post_ra>
// kernel: tpu_custom_call.1
= control target key start
LH: loop header
LB: loop body
LE: loop exit
PB: predicated region body
PF: predicated region fallthrough
CT: control target
= control target key end

     0   :  { %s3590_s0 = inlined_call_operand.hbm [shape: f32[2,8,16], index: 0, kind: input, shape index: {}]   ;;  %s3591_s1 = inlined_call_operand.hbm [shape: f32[8,32], index: 1, kind: input, shape index: {}]   ;;  %s3592_s2 = inlined_call_operand.hbm [shape: bf16[16,32], index: 2, kind: input, shape index: {}]   ;;  %s3593_s3 = inlined_call_operand.hbm [shape: f32[1,32], index: 3, kind: input, shape index: {}]   ;;  %s3594_s4 = inlined_call_operand.vmem [shape: bf16[2,32,384], index: 4, kind: input, shape index: {}]   ;;  %s3595_s5 = inlined_call_operand.hbm [shape: bf16[2,32,32], index: 5, kind: input, shape index: {}]   ;;  %s3596_s6 = inlined_call_operand.hbm [shape: bf16[2,32,2048], index: 6, kind: input, shape index: {}]   ;;  %s3597_s7 = inlined_call_operand.hbm [shape: bf16[2,32,2048], index: 7, kind: input, shape index: {}]   ;;  %s3598_s8 = inlined_call_operand.vmem [shape: f32[2,9,32], index: 8, kind: input, shape index: {}]   ;;  %s3599_s9 = inlined_call_operand.hbm [shape: f32[2,1,2048], index: 9, kind: input, shape index: {}]   ;;  %s3600_s10 = inlined_call_operand.vmem [shape: bf16[32,8], index: 10, kind: input, shape index: {}]   ;;  %s3601_s11 = inlined_call_operand.vmem [shape: f32[1,8], index: 11, kind: input, shape index: {}]   ;;  %s3602_s12 = inlined_call_operand.vmem [shape: bf16[32,4], index: 12, kind: input, shape index: {}]   ;;  %s3603_s13 = inlined_call_operand.vmem [shape: bf16[4,32], index: 13, kind: input, shape index: {}]   ;;  %s3604_s14 = inlined_call_operand.hbm [shape: f32[2,8], index: 14, kind: output, shape index: {}]  }
   0x1   :  { %3628 = sst [smem:[#allocation25_spill]] %s3590_s0 }
   0x2   :  { %3629 = sst [smem:[#allocation26_spill]] %s3594_s4 }
   0x3   :  { %3630 = sst [smem:[#allocation27_spill]] %s3595_s5 }
   0x4   :  { %3631 = sst [smem:[#allocation28_spill]] %s3596_s6 }
   0x5   :  { %3632 = sst [smem:[#allocation29_spill]] %s3598_s8 }
   0x6   :  { %3633 = sst [smem:[#allocation30_spill]] %s3600_s10 }
   0x7   :  { %3634 = sst [smem:[#allocation31_spill]] %s3601_s11 }
   0x8   :  { %3635 = sst [smem:[#allocation32_spill]] %s3602_s12 }
   0x9   :  { %3636 = sst [smem:[#allocation33_spill]] %s3603_s13 }
   0xa   :  { %3637 = sst [smem:[#allocation34_spill]] %s3604_s14 }
   0xb   :  { %19 = vsyncpa [#allocation4], 0 }
   0xc   :  { %20 = vsyncpa [#allocation7], 0 }
   0xd   :  { %21 = vsyncpa [#allocation10], 0 }
   0xe   :  { %22 = vsyncpa [#allocation5], 0  ;;  %s2965_s29 = smov 0   ;;  %s2967_s30 = smov 0  }
   0xf   :  { %s2969_s15 = smov 0   ;;  %s2971_s16 = smov 0  }
  0x10 LB: > { %3638 = sst [smem:[#allocation21_spill]] %s2850_s15  ;;  %s2984_s17 = sadd.s32 4294967295, %s2854_s16   ;;  %s2854_s16 = sphi %s2971_s16, %s3679_s16   ;;  %s2850_s15 = sphi %s2969_s15, %s3681_s15   ;;  %s2846_s30 = sphi %s2967_s30, %s3683_s30   ;;  %s2842_s29 = sphi %s2965_s29, %s3682_s29  }
  0x11   : > { %p158_p0 = scmp.ne.s32.totalorder %s2846_s30, %s2842_s29  ;;  %p3607_p1 = scmp.eq.s32.totalorder %s2984_s17, 0 }
  0x12   : > { %p2179_p2 = scmp.ge.s32.totalorder %s2854_s16, 1  ;;  %p378_p3 = scmp.lt.s32.totalorder %s2854_s16, 3 }
  0x13   : > { %p2993_p5 = por %p3607_p1, %p158_p0  ;;  %s2868_s20 = smov [#allocation3]  }
  0x14   : > { %p2997_p6 = pnand %p2179_p2, %p378_p3  ;;  %s390_s21 = sshll.u32 %s2868_s20, 4  ;;  %s391_s21 = int_to_ptr.vmem [resolvable:$true] %s390_s21 }
  0x15   : > { %s3639_s18 = scalar_select %p2993_p5, 1, 0 }
  0x16   : > { %s3641_s19 = scalar_select %p2997_p6, 1, 0 }
  0x17   : > { %3640 = sst [smem:[#allocation22_spill]] %s3639_s18  ;;  %p2384_p7 = pneg %p2997_p6 }
  0x18   : > { %s3010_s23 = sadd.s32 1, %s2854_s16   ;;  %s145_s24 = sadd.s32 1, %s2850_s15 }
  0x19   : > { %p3005_p8 = pnand %p2384_p7, %p3607_p1  ;;  %3643 = sst [smem:[#allocation23_spill]] %s3010_s23 }
  0x1a   : > { %s142_s25 = ssub.s32 %s2854_s16, %s3010_s23  ;;  %s3644_s0 = sld [smem:[#allocation25_spill]] }
  0x1b   : > { %s3642_s22 = scalar_select %p3005_p8, 1, 0 }
  0x1c   : > { %p3023_p10 = pneg %p3005_p8 }
  0x1e   : > { %s3645_s14 = scalar_select %p3023_p10, 1, 0 }
  0x20   : > { %s2534_s28 = scalar_lea.hbm %s3644_s0, 256 }
  0x21   : > { %p2535_p9 = scmp.ne.s32.totalorder %s3644_s0, %s2534_s28  ;;  %p2541_p13 = scmp.lt.u32.totalorder %s2534_s28, %s3644_s0 }
  0x23   : > { %p2537_p11 = pnand %p3023_p10, %p2535_p9 }
  0x25   : > { %p2538_p12 = pneg %p2537_p11 }
  0x27   : > { %p2543_p0 = pnand %p2541_p13, %p2538_p12 }
  0x29   : > { %2546 = shalt.err (!%p2543_p0)
}
  0x2a   : > { %s2547_s26 = scalar_lea.vmem %s391_s21, 256  ;;  %p2555_p4 = scmp.lt.s32.totalorder %s391_s21, %s391_s21 }
  0x2b   : > { %p2548_p2 = scmp.ne.s32.totalorder %s391_s21, %s2547_s26  ;;  %p2556_p1 = scmp.lt.s32.totalorder %s2547_s26, %s2547_s26 }
  0x2d   : > { %p2550_p3 = pnand %p2548_p2, %p3023_p10  ;;  %p2557_p5 = por %p2556_p1, %p2555_p4 }
  0x2f   : > { %p2551_p7 = pneg %p2550_p3 }
  0x31   : > { %p2558_p6 = pnand %p2557_p5, %p2551_p7 }
  0x33   : > { %2561 = shalt.err (!%p2558_p6)
}
  0x34   : > { %s2869_s27 = smov 128   ;;  %s2870_s10 = smov 8  }
  0x35   : > { %2387 = dma.hbm_to_vmem [thread:$0]  (!%p3005_p8), %s3644_s0, 256, %s391_s21, [#allocation4], %s2869_s27, %s2869_s27, %s2870_s10  }
  0x36   : > { %p143_p1 = scmp.eq.s32.totalorder %s142_s25, 0  ;;  %p152_p4 = scmp.ne.s32.totalorder %s2850_s15, %s2846_s30 }
  0x37   : > { %p153_p5 = scmp.eq.s32.totalorder %s2854_s16, 0  ;;  %p2414_p9 = scmp.lt.s32.totalorder %s2854_s16, 2 }
  0x38   : > { %s3043_s29 = scalar_select %p143_p1, %s2850_s15, %s145_s24  }
  0x39   : > { %p154_p6 = por %p153_p5, %p152_p4  ;;  %s459_s20 = sand.u32 1, %s2854_s16  }
  0x3a   : > { %3646 = sst [smem:[#allocation24_spill]] %s3043_s29  ;;  %s461_s26 = sand.u32 1, %s2850_s15  }
  0x3b   : > { %s3048_s23 = sshll.u32 %s461_s26, 4  ;;  %s3613_s13 = sshll.u32 %s2854_s16, 8 }
  0x3c   : > { %s3647_s5 = sld [smem:[#allocation27_spill]]  ;;  %s463_s21 = scalar_lea.vmem [#allocation11], %s3048_s23 }
  0x3d   : > { %s470_s24 = sshll.u32 %s463_s21, 4  ;;  %p3059_p11 = pnand %p2414_p9, %p154_p6  ;;  %s3063_s24 = int_to_ptr.vmem [resolvable:$true] %s470_s24 }
  0x3e   : > { %s3065_s27 = sshll.u32 %s461_s26, 8  ;;  %s3067_s10 = scalar_lea.sflag [#allocation4], %s459_s20 }
  0x3f   : > { %s3648_s25 = scalar_select %p3059_p11, 1, 0 }
  0x40   : > { %p3073_p13 = pneg %p3059_p11 }
  0x42   : > { %s3056_s8 = scalar_lea.hbm %s3647_s5, %s3613_s13  ;;  %s2567_s21 = scalar_lea.hbm %s3647_s5, 512 }
  0x43   : > { %s2562_s4 = scalar_lea.hbm %s3056_s8, 256  ;;  %p2568_p3 = scmp.lt.u32.totalorder %s3056_s8, %s3647_s5 }
  0x44   : > { %p2563_p12 = scmp.ne.s32.totalorder %s3056_s8, %s2562_s4  ;;  %p2569_p7 = scmp.lt.u32.totalorder %s2567_s21, %s2562_s4 }
  0x45   : > { %s3649_s12 = scalar_select %p3073_p13, 1, 0 }
  0x46   : > { %p2565_p0 = pnand %p3073_p13, %p2563_p12  ;;  %p2570_p1 = por %p2569_p7, %p2568_p3 }
  0x47   : > { %p2571_p4 = scmp.lt.u32.totalorder %s2562_s4, %s3056_s8 }
  0x48   : > { %p2566_p2 = pneg %p2565_p0 }
  0x49   : > { %p2572_p5 = por %p2571_p4, %p2570_p1 }
  0x4b   : > { %p2573_p6 = pnand %p2572_p5, %p2566_p2 }
  0x4d   : > { %2576 = shalt.err (!%p2573_p6)
}
  0x4e   : > { %s2577_s20 = scalar_lea.vmem %s3063_s24, 256  ;;  %s2871_s11 = smov [#allocation11]  }
  0x4f   : > { %p2578_p9 = scmp.ne.s32.totalorder %s3063_s24, %s2577_s20  ;;  %s2582_s28 = sshll.u32 %s2871_s11, 4  ;;  %s2583_s28 = int_to_ptr.vmem [resolvable:$false] %s2582_s28 }
  0x50   : > { %s2584_s13 = scalar_lea.vmem %s2583_s28, 512  ;;  %p2585_p8 = scmp.lt.s32.totalorder %s3063_s24, %s2583_s28 }
  0x51   : > { %p2580_p12 = pnand %p2578_p9, %p3073_p13  ;;  %p2586_p10 = scmp.lt.s32.totalorder %s2584_s13, %s2577_s20 }
  0x53   : > { %p2581_p0 = pneg %p2580_p12  ;;  %p2587_p3 = por %p2586_p10, %p2585_p8 }
  0x55   : > { %p2588_p7 = pnand %p2587_p3, %p2581_p0 }
  0x57   : > { %2591 = shalt.err (!%p2588_p7)
}
  0x58   : > { %s3619_s4 = smov 64   ;;  %s3618_s21 = smov 4  }
  0x59   : > { %2400 = dma.hbm_to_vmem [thread:$0]  (!%p3059_p11), %s3056_s8, 256, %s3063_s24, %s3067_s10, %s3619_s4, %s3619_s4, %s3618_s21  }
  0x5a   : > { %s2284_s26 = sshll.u32 %s2854_s16, 12  ;;  %s484_s20 = scalar_lea.vmem [#allocation12], %s3065_s27 }
  0x5b   : > { %s491_s11 = sshll.u32 %s484_s20, 4  ;;  %s3650_s6 = sld [smem:[#allocation28_spill]]  ;;  %s3109_s11 = int_to_ptr.vmem [resolvable:$true] %s491_s11 }
  0x61   : > { %s3107_s0 = scalar_lea.hbm %s3650_s6, %s2284_s26  ;;  %s2597_s20 = scalar_lea.hbm %s3650_s6, 8192 }
  0x62   : > { %s2592_s5 = scalar_lea.hbm %s3107_s0, 4096  ;;  %p2598_p1 = scmp.lt.u32.totalorder %s3107_s0, %s3650_s6 }
  0x63   : > { %p2593_p8 = scmp.ne.s32.totalorder %s3107_s0, %s2592_s5  ;;  %p2599_p4 = scmp.lt.u32.totalorder %s2597_s20, %s2592_s5 }
  0x64   : > { %p2601_p6 = scmp.lt.u32.totalorder %s2592_s5, %s3107_s0 }
  0x65   : > { %p2595_p10 = pnand %p2593_p8, %p3073_p13  ;;  %p2600_p5 = por %p2599_p4, %p2598_p1 }
  0x67   : > { %p2596_p2 = pneg %p2595_p10  ;;  %p2602_p9 = por %p2601_p6, %p2600_p5 }
  0x69   : > { %p2603_p12 = pnand %p2602_p9, %p2596_p2 }
  0x6b   : > { %2606 = shalt.err (!%p2603_p12)
}
  0x6c   : > { %s2607_s28 = scalar_lea.vmem %s3109_s11, 4096  ;;  %s2874_s13 = smov [#allocation12]  }
  0x6d   : > { %p2608_p0 = scmp.ne.s32.totalorder %s3109_s11, %s2607_s28  ;;  %s2612_s8 = sshll.u32 %s2874_s13, 4  ;;  %s2613_s8 = int_to_ptr.vmem [resolvable:$false] %s2612_s8 }
  0x6e   : > { %s2614_s4 = scalar_lea.vmem %s2613_s8, 8192  ;;  %p2615_p8 = scmp.lt.s32.totalorder %s3109_s11, %s2613_s8 }
  0x6f   : > { %p2610_p3 = pnand %p2608_p0, %p3073_p13  ;;  %p2616_p10 = scmp.lt.s32.totalorder %s2614_s4, %s2607_s28 }
  0x71   : > { %p2611_p7 = pneg %p2610_p3  ;;  %p2617_p1 = por %p2616_p10, %p2615_p8 }
  0x73   : > { %p2618_p4 = pnand %p2617_p1, %p2611_p7 }
  0x75   : > { %2621 = shalt.err (!%p2618_p4)
}
  0x76   : > { %s2875_s5 = smov 1024   ;;  %s3651_s21 = smov 64  }
  0x77   : > { %2403 = dma.hbm_to_vmem [thread:$0]  (!%p3059_p11), %s3107_s0, 4096, %s3109_s11, %s3067_s10, %s2875_s5, %s2875_s5, %s3651_s21  }
  0x78   : > { %s2876_s24 = smov [#allocation6]   ;;  %s3141_s8 = scalar_lea.hbm %s3597_s7, %s2284_s26 }
  0x79   : > { %s404_s20 = sshll.u32 %s2876_s24, 4  ;;  %s2622_s29 = scalar_lea.hbm %s3591_s1, 128  ;;  %s405_s20 = int_to_ptr.vmem [resolvable:$true] %s404_s20 }
  0x7a   : > { %p2623_p2 = scmp.ne.s32.totalorder %s3591_s1, %s2622_s29  ;;  %p3652_p5 = scmp.ne.s32.totalorder %s3645_s14, 0 }
  0x7b   : > { %p2629_p12 = scmp.lt.u32.totalorder %s2622_s29, %s3591_s1 }
  0x7c   : > { %p2625_p6 = pnand %p2623_p2, %p3652_p5 }
  0x7e   : > { %p2626_p9 = pneg %p2625_p6 }
  0x80   : > { %p2631_p0 = pnand %p2629_p12, %p2626_p9 }
  0x82   : > { %2634 = shalt.err (!%p2631_p0)
}
  0x83   : > { %s2635_s24 = scalar_lea.vmem %s405_s20, 128  ;;  %p2643_p10 = scmp.lt.s32.totalorder %s405_s20, %s405_s20 }
  0x84   : > { %p2636_p3 = scmp.ne.s32.totalorder %s405_s20, %s2635_s24  ;;  %p2644_p1 = scmp.lt.s32.totalorder %s2635_s24, %s2635_s24 }
  0x86   : > { %p2638_p7 = pnand %p2636_p3, %p3652_p5  ;;  %p2645_p4 = por %p2644_p1, %p2643_p10 }
  0x88   : > { %p2639_p8 = pneg %p2638_p7 }
  0x8a   : > { %p2646_p11 = pnand %p2645_p4, %p2639_p8 }
  0x8c   : > { %2649 = shalt.err (!%p2646_p11)
}
  0x8d   : > { %p3653_p2 = scmp.ne.s32.totalorder %s3642_s22, 0  ;;  %s505_s18 = scalar_lea.vmem [#allocation13], %s3065_s27 }
  0x8e   : > { %s512_s29 = sshll.u32 %s505_s18, 4  ;;  %s2877_s26 = smov [#allocation8]   ;;  %s3162_s29 = int_to_ptr.vmem [resolvable:$true] %s512_s29 }
  0x8f   : > { %2390 = dma.hbm_to_vmem [thread:$0]  (!%p3653_p2), %s3591_s1, 128, %s405_s20, [#allocation7]  }
  0x90   : > { %s3164_s28 = sshll.u32 %s2877_s26, 4  ;;  %s2650_s13 = scalar_lea.hbm %s3141_s8, 4096  ;;  %s415_s28 = int_to_ptr.vmem [resolvable:$true] %s3164_s28 }
  0x91   : > { %p2651_p11 = scmp.ne.s32.totalorder %s3141_s8, %s2650_s13  ;;  %s2655_s11 = scalar_lea.hbm %s3597_s7, 8192 }
  0x92   : > { %p2656_p12 = scmp.lt.u32.totalorder %s3141_s8, %s3597_s7  ;;  %p2657_p0 = scmp.lt.u32.totalorder %s2655_s11, %s2650_s13 }
  0x93   : > { %p2653_p6 = pnand %p2651_p11, %p3073_p13  ;;  %p2659_p7 = scmp.lt.u32.totalorder %s2650_s13, %s3141_s8 }
  0x94   : > { %p2658_p3 = por %p2657_p0, %p2656_p12 }
  0x95   : > { %p2654_p9 = pneg %p2653_p6 }
  0x96   : > { %p2660_p8 = por %p2659_p7, %p2658_p3 }
  0x98   : > { %p2661_p10 = pnand %p2660_p8, %p2654_p9 }
  0x9a   : > { %2664 = shalt.err (!%p2661_p10)
}
  0x9b   : > { %s2665_s27 = scalar_lea.vmem %s3162_s29, 4096  ;;  %s2878_s20 = smov [#allocation13]  }
  0x9c   : > { %p2666_p1 = scmp.ne.s32.totalorder %s3162_s29, %s2665_s27  ;;  %s2670_s15 = sshll.u32 %s2878_s20, 4  ;;  %s2671_s15 = int_to_ptr.vmem [resolvable:$false] %s2670_s15 }
  0x9d   : > { %s2672_s18 = scalar_lea.vmem %s2671_s15, 8192  ;;  %p2673_p6 = scmp.lt.s32.totalorder %s3162_s29, %s2671_s15 }
  0x9e   : > { %p2668_p4 = pnand %p2666_p1, %p3073_p13  ;;  %p2674_p2 = scmp.lt.s32.totalorder %s2672_s18, %s2665_s27 }
  0xa0   : > { %p2669_p11 = pneg %p2668_p4  ;;  %p2675_p12 = por %p2674_p2, %p2673_p6 }
  0xa2   : > { %p2676_p0 = pnand %p2675_p12, %p2669_p11 }
  0xa4   : > { %2679 = shalt.err (!%p2676_p0)
}
  0xa5   : > { %p3654_p9 = scmp.ne.s32.totalorder %s3648_s25, 0  ;;  %s2680_s4 = scalar_lea.hbm %s3592_s2, 128 }
  0xa6   : > { %p2681_p2 = scmp.ne.s32.totalorder %s3592_s2, %s2680_s4  ;;  %p2687_p8 = scmp.lt.u32.totalorder %s2680_s4, %s3592_s2 }
  0xa7   : > { %2406 = dma.hbm_to_vmem [thread:$0]  (!%p3654_p9), %s3141_s8, 4096, %s3162_s29, %s3067_s10, %s2875_s5, %s2875_s5, %s3651_s21  }
  0xa8   : > { %p2683_p3 = pnand %p2681_p2, %p3652_p5 }
  0xaa   : > { %p2684_p7 = pneg %p2683_p3 }
  0xac   : > { %p2689_p10 = pnand %p2687_p8, %p2684_p7 }
  0xae   : > { %2692 = shalt.err (!%p2689_p10)
}
  0xaf   : > { %s2693_s27 = scalar_lea.vmem %s415_s28, 128  ;;  %p2701_p6 = scmp.lt.s32.totalorder %s415_s28, %s415_s28 }
  0xb0   : > { %p2694_p1 = scmp.ne.s32.totalorder %s415_s28, %s2693_s27  ;;  %p2702_p12 = scmp.lt.s32.totalorder %s2693_s27, %s2693_s27 }
  0xb2   : > { %p2696_p4 = pnand %p2694_p1, %p3652_p5  ;;  %p2703_p0 = por %p2702_p12, %p2701_p6 }
  0xb4   : > { %p2697_p11 = pneg %p2696_p4 }
  0xb6   : > { %p2704_p9 = pnand %p2703_p0, %p2697_p11 }
  0xb8   : > { %2707 = shalt.err (!%p2704_p9)
}
  0xb9   : > { %p3655_p2 = scmp.ne.s32.totalorder %s3642_s22, 0  ;;  %s3656_s5 = smov 4  }
  0xba   : > { %s2879_s20 = smov [#allocation9]   ;;  %s3657_s18 = sshll.u32 %s2854_s16, 8 }
  0xbb   : > { %2393 = dma.hbm_to_vmem [thread:$0]  (!%p3655_p2), %s3592_s2, 128, %s415_s28, [#allocation7], %s3651_s21, %s3651_s21, %s3656_s5  }
  0xbc   : > { %s428_s15 = sshll.u32 %s2879_s20, 4  ;;  %s3218_s4 = scalar_lea.hbm %s3599_s9, %s3657_s18  ;;  %s429_s15 = int_to_ptr.vmem [resolvable:$true] %s428_s15 }
  0xbd   : > { %s2708_s24 = scalar_lea.hbm %s3593_s3, 16 }
  0xbe   : > { %p2709_p9 = scmp.ne.s32.totalorder %s3593_s3, %s2708_s24  ;;  %p2715_p8 = scmp.lt.u32.totalorder %s2708_s24, %s3593_s3 }
  0xc0   : > { %p2711_p3 = pnand %p2709_p9, %p3652_p5 }
  0xc2   : > { %p2712_p7 = pneg %p2711_p3 }
  0xc4   : > { %p2717_p10 = pnand %p2715_p8, %p2712_p7 }
  0xc6   : > { %2720 = shalt.err (!%p2717_p10)
}
  0xc7   : > { %s2721_s16 = scalar_lea.vmem %s429_s15, 16  ;;  %s2728_s5 = scalar_lea.vmem %s429_s15, 32 }
  0xc8   : > { %p2722_p1 = scmp.ne.s32.totalorder %s429_s15, %s2721_s16  ;;  %p2729_p6 = scmp.lt.s32.totalorder %s429_s15, %s429_s15 }
  0xc9   : > { %p2730_p12 = scmp.lt.s32.totalorder %s2728_s5, %s2721_s16 }
  0xca   : > { %p2724_p4 = pnand %p2722_p1, %p3652_p5 }
  0xcb   : > { %p2731_p0 = por %p2730_p12, %p2729_p6 }
  0xcc   : > { %p2725_p11 = pneg %p2724_p4 }
  0xce   : > { %p2732_p13 = pnand %p2731_p0, %p2725_p11 }
  0xd0   : > { %2735 = shalt.err (!%p2732_p13)
}
  0xd1   : > { %2396 = dma.hbm_to_vmem [thread:$0]  (!%p3655_p2), %s3593_s3, 16, %s429_s15, [#allocation10]  }
  0xd2   : > { %s534_s14 = scalar_lea.vmem [#allocation14], %s3048_s23  ;;  %s2736_s18 = scalar_lea.hbm %s3218_s4, 256 }
  0xd3   : > { %s542_s20 = sshll.u32 %s534_s14, 4  ;;  %p2737_p5 = scmp.ne.s32.totalorder %s3218_s4, %s2736_s18  ;;  %s543_s20 = int_to_ptr.vmem [resolvable:$true] %s542_s20 }
  0xd4   : > { %p3658_p9 = scmp.ne.s32.totalorder %s3649_s12, 0  ;;  %s2741_s13 = scalar_lea.hbm %s3599_s9, 512 }
  0xd5   : > { %p2742_p7 = scmp.lt.u32.totalorder %s3218_s4, %s3599_s9  ;;  %p2743_p8 = scmp.lt.u32.totalorder %s2741_s13, %s2736_s18 }
  0xd6   : > { %p2739_p3 = pnand %p2737_p5, %p3658_p9  ;;  %p2745_p1 = scmp.lt.u32.totalorder %s2736_s18, %s3218_s4 }
  0xd7   : > { %p2744_p10 = por %p2743_p8, %p2742_p7 }
  0xd8   : > { %p2740_p13 = pneg %p2739_p3 }
  0xd9   : > { %p2746_p2 = por %p2745_p1, %p2744_p10 }
  0xdb   : > { %p2747_p4 = pnand %p2746_p2, %p2740_p13 }
  0xdd   : > { %2750 = shalt.err (!%p2747_p4)
}
  0xde   : > { %s2751_s23 = scalar_lea.vmem %s543_s20, 256  ;;  %s2880_s15 = smov [#allocation14]  }
  0xdf   : > { %p2752_p11 = scmp.ne.s32.totalorder %s543_s20, %s2751_s23  ;;  %s2756_s24 = sshll.u32 %s2880_s15, 4  ;;  %s2757_s24 = int_to_ptr.vmem [resolvable:$false] %s2756_s24 }
  0xe0   : > { %s2758_s6 = scalar_lea.vmem %s2757_s24, 512  ;;  %p2759_p0 = scmp.lt.s32.totalorder %s543_s20, %s2757_s24 }
  0xe1   : > { %p2754_p6 = pnand %p2752_p11, %p3658_p9  ;;  %p2760_p5 = scmp.lt.s32.totalorder %s2758_s6, %s2751_s23 }
  0xe3   : > { %p2755_p12 = pneg %p2754_p6  ;;  %p2761_p3 = por %p2760_p5, %p2759_p0 }
  0xe5   : > { %p2762_p7 = pnand %p2761_p3, %p2755_p12 }
  0xe7   : > { %2765 = shalt.err (!%p2762_p7)
}
  0xe8   : > { %p3659_p8 = scmp.ne.s32.totalorder %s3648_s25, 0  ;;  %p3660_p13 = scmp.ne.s32.totalorder %s3641_s19, 0 }
  0xe9   : > { %p3661_p9 = scmp.eq.s32.totalorder (!%p3660_p13), %s2984_s17, 0 }
  0xea   : > { %2409 = dma.hbm_to_vmem [thread:$0]  (!%p3659_p8), %s3218_s4, 256, %s543_s20, %s3067_s10  }
  0xeb   : > { %551 = sbr.rel (%p3660_p13) target bundleno = 3104 (0xc20), region = 76 }
  0xf2   : > { %2821 = dma.done.wait (%p3661_p9), [#allocation4], 256   ;;  %p3662_p10 = pmov %p3661_p9 }
  0xf3   : > { %p3663_p1 = pmov %p3661_p9 }
  0xf4   : > { %2823 = vsyncadd (%p3662_p10), [#allocation4], 4294967040 }
  0xf5   : > { %2825 = dma.done.wait (%p3663_p1), [#allocation7], 256   ;;  %p3664_p2 = pmov %p3663_p1 }
  0xf6   : > { %p3665_p4 = pmov %p3663_p1 }
  0xf7   : > { %2827 = vsyncadd (%p3664_p2), [#allocation7], 4294967040 }
  0xf8   : > { %2829 = dma.done.wait (%p3665_p4), [#allocation10], 16   ;;  %p3666_p11 = pmov %p3663_p1 }
  0xf9   : > { %s3667_s19 = sld [smem:[#allocation22_spill]]  ;;  %s569_s25 = sand.u32 1, %s2984_s17  }
  0xfa   : > { %2831 = vsyncadd (%p3666_p11), [#allocation10], 4294967280  ;;  %s571_s10 = sand.u32 1, %s2846_s30   ;;  %s570_s4 = scalar_lea.sflag [#allocation4], %s569_s25 }
  0xfb   : > { %s3273_s12 = sshll.u32 %s571_s10, 4 }
  0xfc   : > { %s573_s27 = scalar_lea.vmem [#allocation11], %s3273_s12 }
  0xff   : > { %p3668_p6 = scmp.ne.s32.totalorder %s3667_s19, 0 }
 0x101   : > { %2833 = dma.done.wait (%p3668_p6), %s570_s4, 8704  }
 0x102   : > { %2835 = vsyncadd (%p3668_p6), %s570_s4, 4294958592  ;;  %s3280_s21 = sshll.u32 %s571_s10, 8  ;;  %p665_p12 = scmp.lt.s32.totalorder %s2984_s17, 1 }
 0x103   : > { %s3669_s14 = sld [smem:[#allocation29_spill]]  ;;  %s3670_s22 = sld [smem:[#allocation26_spill]] }
 0x104   : > { %s666_s28 = scalar_select %p665_p12, %s2984_s17, 1 }
 0x105   : > { %s582_s0 = scalar_lea.vmem [#allocation12], %s3280_s21  ;;  %s591_s11 = scalar_lea.vmem [#allocation13], %s3280_s21 }
 0x106   : > { %s2355_s16 = smul.u32 48, %s666_s28  ;;  %s2287_s5 = sshll.u32 %s666_s28, 4 }
 0x107   : > { %s600_s23 = scalar_lea.vmem [#allocation14], %s3273_s12  ;;  %p3671_p0 = scmp.ne.s32.totalorder %s2984_s17, 0 }
 0x108   : > { %v2495_v0 = vld [vmem:[#allocation8] sm:$0xff] (!%p3671_p0)   ;;  %v2881_v1 = vmov (!%p3671_p0), 0.0   ;;  %v680_v2 = vld [vmem:[#allocation3] sm:$0xff] (!%p3671_p0)  ;;  %v681_v3 = vld [vmem:[#allocation3 + $0x8] sm:$0xff] (!%p3671_p0)  ;;  %vm2882_vm0 = vmmov (!%p3671_p0), 0   ;;  %vm698_vm1 = vcmask (!%p3671_p0), 130048  }
 0x109   : > { %s3287_s20 = scalar_lea.vmem %s3669_s14, %s2287_s5  ;;  %s3292_s13 = scalar_lea.vmem %s3670_s22, %s2355_s16  ;;  %2310 = vmatprep.subr.bf16.mxu0 (!%p3671_p0), %v2881_v1  ;;  %2312 = vmatprep.mubr.msk.bf16.mxu0 (!%p3671_p0), %vm2882_vm0, %v2881_v1  ;;  %v682_v4 = vpack.c.bf16 (!%p3671_p0), %v681_v3, %v680_v2  ;;  %v2210_v5 = vld [vmem:[#allocation9] ss:$0 sm:$0xff] (!%p3671_p0)  ;;  %v743_v7 = vld [vmem:[#allocation6] sm:$0xff] (!%p3671_p0)  ;;  %vm746_vm2 = vcmask (!%p3671_p0), 261120  }
 0x10a   : > { %679 = sbr.rel (%p3671_p0) target bundleno = 488 (0x1e8), region = 112  ;;  %2311 = vmatpush3.bf16.msra.mxu0 (!%p3671_p0), %v2495_v0 }
 0x10d   : > { %2313 = vmatmul.mubr.msk.bf16.vlgmr.msra.gmra.mrb[0].mxu0 (!%p3671_p0), %vm698_vm1, %v682_v4 }
 0x1e0   : > { %v736_v6 = vpop.f32.mrb[0].mxu0 }
 0x1e1   : > { %v737_v8 = vadd.f32 %v2210_v5, %v736_v6  ;;  %v2314_v9 = vpop.f32.mrb[1].mxu0 }
 0x1e2   : > { %v739_v10 = vpop.f32.mrb[2].mxu0 }
 0x1e3   : > { %v744_v11 = vadd.f32 %v743_v7, %v737_v8  ;;  %v740_v12 = vadd.f32 %v2210_v5, %v739_v10  ;;  %v2315_v13 = vpop.f32.mrb[3].mxu0 }
 0x1e5   : > { %747 = vst.msk [vmem:[#allocation2] sm:$0xff] %vm746_vm2, %v744_v11  ;;  %v745_v14 = vadd.f32 %v743_v7, %v740_v12 }
 0x1e7   : > { %748 = vst.msk [vmem:[#allocation2 + $0x8] sm:$0xff] %vm746_vm2, %v745_v14 }
 0x1e8 PF: > { %v3300_v15 = vld [vmem:[%s3287_s20 + $0x8] ss:$0 sm:$0xff]  ;;  %v2496_v16 = vld [vmem:[%s3292_s13 + $0x4] ss:$12 sps:$4 sm:$0xff]   ;;  %v2498_v17 = vld [vmem:[%s3292_s13] ss:$12 sps:$4 sm:$0xff]   ;;  %v882_v26 = vlaneseq }
 0x1e9   : > { %v2883_v18 = vmov 0   ;;  %v2499_v19 = vld [vmem:[%s3292_s13 + $0x1c] ss:$12 sps:$4 sm:$0xff]   ;;  %798 = vmatprep.subr.bf16.mxu0 %v2496_v16  ;;  %v2501_v20 = vld [vmem:[%s3292_s13 + $0x18] ss:$12 sps:$4 sm:$0xff]   ;;  %vm794_vm3 = vcmask 261120  }
 0x1ea   : > { %830 = vmatprep.mubr.bf16.mxu0 %v2883_v18  ;;  %799 = vmatpush1.bf16.msra.mxu0 %v2498_v17  ;;  %s3672_s6 = sld [smem:[#allocation32_spill]]  ;;  %v3319_v27 = vshrl.u32 %v882_v26, 7  ;;  %v3323_v29 = vld [vmem:[%s3287_s20] sm:$0xff]  ;;  %v2504_v47 = vld [vmem:[%s3292_s13 + $0x8] ss:$12 sps:$4 sm:$0xff]   ;;  %v2884_v48 = vmov 0.0  }
 0x1eb   : > { %800 = vmatprep.subr.bf16.mxu0 %v2499_v19  ;;  %2316 = vmatprep.subr.bf16.mxu1 %v2884_v48  ;;  %v2505_v49 = vld [vmem:[%s3292_s13 + $0x20] ss:$12 sps:$4 sm:$0xff]   ;;  %vm2885_vm4 = vmmov 0   ;;  %s3673_s28 = sld [smem:[#allocation33_spill]]  ;;  %vm1041_vm5 = vcmask 1041408   ;;  %vm989_vm6 = vcmask 31744  }
 0x1ec   : > { %v3306_v21 = vld [vmem:[#allocation2] sm:$0xff]  ;;  %v884_v28 = vsub.s32 0, %v3319_v27  ;;  %v890_v30 = vsub.s32 1, %v3319_v27  ;;  %2317 = vmatpush3.bf16.msra.mxu1 %v2504_v47  ;;  %2320 = vmatprep.mubr.msk.bf16.mxu1 %vm2885_vm4, %v2884_v48 }
 0x1ed   : > { %2318 = vmatprep.subr.bf16.mxu1 %v2884_v48 }
 0x1ee   : > { %v3308_v22 = vld [vmem:[#allocation2 + $0x8] sm:$0xff]  ;;  %801 = vmatpush1.bf16.msra.mxu0 %v2501_v20  ;;  %v885_v31 = vrot.slane %v3323_v29, %v884_v28  ;;  %v891_v32 = vrot.slane %v3323_v29, %v890_v30 }
 0x1ef   : > { %v753_v23 = vpack.c.bf16 %v3308_v22, %v3306_v21 }
 0x1f0   : > { %v2502_v24 = vld [vmem:[%s3672_s6] sm:$0xff]   ;;  %v2503_v25 = vld [vmem:[%s3672_s6 + $0x8] sm:$0xff]   ;;  %2319 = vmatpush3.bf16.msra.mxu1 %v2505_v49 }
 0x1f1   : > { %2219 = vmatmul.mubr.msk.bf16.vlgmr.msra.gmra.mrb[0].mxu0 %vm794_vm3, %v753_v23  ;;  %2324 = vmatprep.subr.bf16.mxu0 %v2502_v24  ;;  %v1024_v50 = vld [vmem:[%s3673_s28] sm:$0x3] }
 0x1f2   : > { %2325 = vmatpush3.bf16.msra.mxu0 %v2502_v24  ;;  %2354 = vmatprep.subr.msk.bf16.mxu1 %vm1041_vm5, %v1024_v50  ;;  %v1043_v51 = vsel %vm1041_vm5, %v1024_v50, 0 }
 0x1f3   : > { %2326 = vmatprep.subr.bf16.mxu0 %v2503_v25  ;;  %2321 = vmatmul.mubr.msk.bf16.vlgmr.msra.gmra.mrb[0].mxu1 %vm794_vm3, %v753_v23 }
 0x1f4   : > { %2333 = vmatpush3.bf16.msra.mxu1 %v1043_v51 }
 0x1f6   : > { %2327 = vmatpush3.bf16.msra.mxu0 %v2503_v25 }
 0x1f7   : > { %2338 = vmatprep.subr.bf16.mxu0 %v2884_v48 }
 0x2c4   : > { %v832_v33 = vpop.f32.mrb[0].mxu0 }
 0x2c5   : > { %v886_v34 = vadd.f32 %v885_v31, %v832_v33  ;;  %v834_v35 = vpop.f32.mrb[1].mxu0 }
 0x2c6   : > { %v892_v36 = vadd.f32 %v891_v32, %v834_v35  ;;  %v836_v37 = vpop.f32.mrb[2].mxu0  ;;  %v2506_v35 = vld [vmem:[%s573_s27] sm:$0xff]  }
 0x2c7   : > { %v887_v38 = vadd.f32 %v885_v31, %v836_v37  ;;  %v838_v39 = vpop.f32.mrb[3].mxu0  ;;  %v875_v31 = vpop.f32.mrb[0].mxu1  ;;  %v896_v37 = vsub.s32 2, %v3319_v27 }
 0x2c8   : > { %v900_v40 = vmul.f32 %v892_v36, %v886_v34  ;;  %v893_v41 = vadd.f32 %v891_v32, %v838_v39  ;;  %v2322_v32 = vpop.f32.mrb[1].mxu1 }
 0x2c9   : > { %v902_v42 = vmul.f32 %v892_v36, %v887_v38  ;;  %v878_v33 = vpop.f32.mrb[2].mxu1  ;;  %v2507_v36 = vld [vmem:[%s573_s27 + $0x8] sm:$0xff]   ;;  %s3399_s27 = smov 0  }
 0x2ca   : > { %v901_v43 = vmul.f32 %v893_v41, %v886_v34  ;;  %v903_v44 = vmul.f32 %v893_v41, %v887_v38  ;;  %v2323_v34 = vpop.f32.mrb[3].mxu1  ;;  %v897_v38 = vrot.slane %v3323_v29, %v896_v37 }
 0x2cc   : > { %v2288_v45 = vpack.c.bf16 %v901_v43, %v900_v40  ;;  %v2289_v46 = vpack.c.bf16 %v903_v44, %v902_v42  ;;  %v898_v39 = vadd.f32 %v897_v38, %v875_v31  ;;  %v899_v41 = vadd.f32 %v897_v38, %v878_v33 }
 0x2ce   : > { %2328 = vmatprep.mubr.msk.bf16.mxu0 %vm794_vm3, %v2288_v45 }
 0x2cf   : > { %2329 = vmatmul.mubr.msk.bf16.vlgmr.msra.gmra.mrb[4].mxu0 %vm794_vm3, %v2289_v46 }
 0x2d0   : > { %2342 = vmatprep.mubr.msk.bf16.mxu0 %vm2885_vm4, %v2884_v48  ;;  %2339 = vmatpush3.bf16.msra.mxu0 %v2506_v35 }
 0x2d1   : > { %2340 = vmatprep.subr.bf16.mxu0 %v2884_v48 }
 0x2d4   : > { %2341 = vmatpush3.bf16.msra.mxu0 %v2507_v36 }
 0x3a2   : > { %v2330_v52 = vpop.f32.mrb[4].mxu0 }
 0x3a3   : > { %v974_v53 = vpop.f32.mrb[5].mxu0  ;;  %v993_v55 = vsel %vm989_vm6, %v2330_v52, -inf }
 0x3a4   : > { %v2331_v54 = vpop.f32.mrb[6].mxu0  ;;  %v990_v58 = vsel %vm989_vm6, %v974_v53, -inf }
 0x3a5   : > { %v994_v56 = vsel %vm989_vm6, %v2331_v54, -inf  ;;  %v977_v57 = vpop.f32.mrb[7].mxu0 }
 0x3a6   : > { %v995_v59 = vmax.f32 %v993_v55, %v994_v56  ;;  %v991_v60 = vsel %vm989_vm6, %v977_v57, -inf  ;;  %v1111_v56 = vsub.s32 3, %v3319_v27 }
 0x3a7   : > { %v992_v61 = vmax.f32 %v990_v58, %v991_v60 }
 0x3a8   : > { %v998_v62 = vsub.f32 %v2330_v52, %v995_v59  ;;  %v999_v63 = vsub.f32 %v2331_v54, %v995_v59 }
 0x3a9   : > { %v996_v0 = vsub.f32 %v974_v53, %v992_v61  ;;  %v997_v1 = vsub.f32 %v977_v57, %v992_v61  ;;  %v1112_v57 = vrot.slane %v3323_v29, %v1111_v56 }
 0x3aa   : > { %v1004_v2 = vmul.f32 1.442695, %v998_v62  ;;  %v1006_v3 = vmul.f32 1.442695, %v999_v63 }
 0x3ab   : > { %v1000_v4 = vmul.f32 1.442695, %v996_v0  ;;  %v1002_v5 = vmul.f32 1.442695, %v997_v1 }
 0x3ac   : > { %2508 = vpow2.f32 %v1004_v2 }
 0x3ad   : > { %2510 = vpow2.f32 %v1006_v3 }
 0x3ae   : > { %2512 = vpow2.f32 %v1000_v4 }
 0x3af   : > { %2514 = vpow2.f32 %v1002_v5 }
 0x3b6   : > { %v2509_v6 = vpop.eup %2508 }
 0x3b7   : > { %v2511_v7 = vpop.eup %2510  ;;  %v1011_v8 = vsel %vm989_vm6, %v2509_v6, 0.0 }
 0x3b8   : > { %v2513_v9 = vpop.eup %2512  ;;  %v1012_v10 = vsel %vm989_vm6, %v2511_v7, 0.0 }
 0x3b9   : > { %v2515_v11 = vpop.eup %2514  ;;  %v1013_v12 = vadd.f32 %v1012_v10, %v1011_v8  ;;  %v1008_v13 = vsel %vm989_vm6, %v2513_v9, 0.0 }
 0x3ba   : > { %v1009_v14 = vsel %vm989_vm6, %v2515_v11, 0.0 }
 0x3bb   : > { %2516 = vrcp.f32 %v1013_v12  ;;  %v1010_v16 = vadd.f32 %v1009_v14, %v1008_v13 }
 0x3bd   : > { %2518 = vrcp.f32 %v1010_v16 }
 0x3c5   : > { %v2517_v17 = vpop.eup %2516 }
 0x3c6   : > { %v1019_v18 = vmul.f32 %v2517_v17, %v2511_v7  ;;  %v1018_v19 = vmul.f32 %v2517_v17, %v2509_v6 }
 0x3c7   : > { %v2519_v20 = vpop.eup %2518 }
 0x3c8   : > { %v1015_v23 = vmul.f32 %v2519_v20, %v2513_v9  ;;  %v1016_v24 = vmul.f32 %v2519_v20, %v2515_v11  ;;  %v2291_v25 = vpack.c.bf16 %v1019_v18, %v1018_v19  ;;  %v1200_v19 = vsub.s32 4, %v3319_v27 }
 0x3ca   : > { %v2290_v26 = vpack.c.bf16 %v1016_v24, %v1015_v23  ;;  %v1201_v23 = vrot.slane %v3323_v29, %v1200_v19  ;;  %v1206_v24 = vsub.s32 5, %v3319_v27 }
 0x3cc   : > { %2334 = vmatprep.mubr.msk.bf16.mxu1 %vm989_vm6, %v2290_v26  ;;  %v1207_v31 = vrot.slane %v3323_v29, %v1206_v24 }
 0x3cd   : > { %2335 = vmatmul.mubr.msk.bf16.vlgmr.msra.gmra.mrb[4].mxu1 %vm989_vm6, %v2291_v25 }
 0x4a0   : > { %v2336_v40 = vpop.f32.mrb[4].mxu1 }
 0x4a1   : > { %v1096_v42 = vmul.f32 %v2336_v40, %v898_v39  ;;  %v1079_v43 = vpop.f32.mrb[5].mxu1  ;;  %v3397_v40 = vmov 0.0  }
 0x4a2   : > { %v1094_v44 = vmul.f32 %v1079_v43, %v898_v39  ;;  %v2337_v45 = vpop.f32.mrb[6].mxu1  ;;  %v3395_v39 = vmov 0.0  }
 0x4a3   : > { %v1097_v46 = vmul.f32 %v2337_v45, %v899_v41  ;;  %v1082_v47 = vpop.f32.mrb[7].mxu1  ;;  %v1101_v48 = vsel %vm794_vm3, %v1096_v42, 0.0 }
 0x4a4   : > { %v1095_v49 = vmul.f32 %v1082_v47, %v899_v41  ;;  %v1098_v51 = vsel %vm794_vm3, %v1094_v44, 0.0 }
 0x4a5   : > { %v1102_v50 = vsel %vm794_vm3, %v1097_v46, 0.0 }
 0x4a6   : > { %v1103_v52 = vadd.f32 %v1102_v50, %v1101_v48  ;;  %v1099_v53 = vsel %vm794_vm3, %v1095_v49, 0.0 }
 0x4a7   : > { %v1100_v54 = vadd.f32 %v1099_v53, %v1098_v51 }
 0x4a9   : > { %v1104_v55 = vpack.c.bf16 %v1103_v52, %v1100_v54 }
 0x4ab   : > { %2343 = vmatmul.mubr.msk.bf16.vlgmr.msra.gmra.mrb[8].mxu0 %vm794_vm3, %v1104_v55 }
 0x57e   : > { %v1162_v58 = vpop.f32.mrb[8].mxu0 }
 0x57f   : > { %v1163_v59 = vadd.f32 %v1162_v58, %v1112_v57  ;;  %v2344_v60 = vpop.f32.mrb[9].mxu0 }
 0x580   : > { %v1165_v61 = vpop.f32.mrb[10].mxu0 }
 0x581   : > { %v1166_v62 = vadd.f32 %v1165_v61, %v1112_v57  ;;  %v2345_v63 = vpop.f32.mrb[11].mxu0  ;;  %v1169_v0 = vadd.f32 %v1163_v59, %v3306_v21 }
 0x583   : > { %v1171_v1 = vsel %vm794_vm3, %v1169_v0, 0.0  ;;  %v1170_v2 = vadd.f32 %v1166_v62, %v3308_v22 }
 0x584   : > { %1172 = vadd.xlane.f32.xlu0 %v1171_v1 }
 0x585   : > { %v1174_v3 = vsel %vm794_vm3, %v1170_v2, 0.0 }
 0x588   : > { %1175 = vadd.xlane.f32.xlu0 %v1174_v3 }
 0x611   : > { %v1173_v4 = vpop.xlane.xlu0 %1172 }
 0x612   : > { %v1178_v5 = vmul.f32 0.03125, %v1173_v4 }
 0x614   : > { %v1180_v6 = vsub.f32 %v1169_v0, %v1178_v5 }
 0x615   : > { %v1176_v7 = vpop.xlane.xlu0 %1175 }
 0x616   : > { %v1179_v8 = vmul.f32 0.03125, %v1176_v7  ;;  %v1182_v9 = vmul.f32 %v1180_v6, %v1180_v6 }
 0x618   : > { %v1181_v10 = vsub.f32 %v1170_v2, %v1179_v8  ;;  %v1184_v11 = vsel %vm794_vm3, %v1182_v9, 0.0 }
 0x619   : > { %1185 = vadd.xlane.f32.xlu1 %v1184_v11 }
 0x61a   : > { %v1183_v12 = vmul.f32 %v1181_v10, %v1181_v10 }
 0x61c   : > { %v1187_v21 = vsel %vm794_vm3, %v1183_v12, 0.0 }
 0x61d   : > { %1188 = vadd.xlane.f32.xlu1 %v1187_v21 }
 0x6a6   : > { %v1186_v13 = vpop.xlane.xlu1 %1185 }
 0x6a7   : > { %v1190_v22 = vmul.f32 0.03125, %v1186_v13 }
 0x6a9   : > { %v1192_v14 = vadd.f32 1e-05, %v1190_v22 }
 0x6aa   : > { %v1189_v16 = vpop.xlane.xlu1 %1188 }
 0x6ab   : > { %2520 = vrsqrt.f32 %v1192_v14  ;;  %v1191_v17 = vmul.f32 0.03125, %v1189_v16 }
 0x6ad   : > { %v1193_v18 = vadd.f32 1e-05, %v1191_v17 }
 0x6af   : > { %2522 = vrsqrt.f32 %v1193_v18 }
 0x6b5   : > { %v2521_v20 = vpop.eup %2520 }
 0x6b6   : > { %v1196_v25 = vmul.f32 %v2521_v20, %v1180_v6 }
 0x6b8   : > { %v1202_v32 = vmul.f32 %v1201_v23, %v1196_v25 }
 0x6b9   : > { %v2523_v26 = vpop.eup %2522 }
 0x6ba   : > { %v1197_v33 = vmul.f32 %v2523_v26, %v1181_v10  ;;  %v3387_v35 = vadd.f32 %v1207_v31, %v1202_v32 }
 0x6bc   : > { %v1203_v34 = vmul.f32 %v1201_v23, %v1197_v33 }
 0x6be   : > { %v3389_v36 = vadd.f32 %v1207_v31, %v1203_v34 }
 0x6c0   : > { %v3393_v38 = vpack.c.bf16 %v3389_v36, %v3387_v35 }
 0x6c1 LB: >> { %v2886_v41 = vmov 0   ;;  %s2234_s16 = sshll.u32 %s2866_s27, 10  ;;  %s1216_s27 = sadd.s32 1, %s2866_s27   ;;  %s2866_s27 = sphi %s3399_s27, %s1216_s27   ;;  %v2862_v40 = vphi %v3397_v40, %v3675_v40   ;;  %v2858_v39 = vphi %v3395_v39, %v3674_v39  }
 0x6c2   : >> { %1398 = vmatprep.mubr.bf16.mxu0 %v2886_v41  ;;  %1441 = vmatprep.mubr.bf16.mxu1 %v2886_v41  ;;  %s3413_s5 = sshra.s32 %s2234_s16, 7  ;;  %p1213_p5 = scmp.ge.s32.totalorder %s1216_s27, 2  }
 0x6c3   : >> { %s2235_s8 = sshll.u32 %s3413_s5, 2  ;;  %s1240_s20 = scalar_lea.vmem %s600_s23, %s3413_s5 [#allocation14] }
 0x6c4   : >> { %s3420_s29 = scalar_lea.vmem %s582_s0, %s2235_s8 [#allocation12]  ;;  %s3440_s14 = scalar_lea.vmem %s591_s11, %s2235_s8 [#allocation13] }
 0x6c5   : >> { %v1224_v42 = vld [vmem:[%s3420_s29] sm:$0xff]  ;;  %v1225_v44 = vld [vmem:[%s3420_s29 + $0x8] sm:$0xff]  ;;  %v1226_v55 = vld [vmem:[%s3420_s29 + $0x10] sm:$0xff]  ;;  %p2274_p3 = scmp.ne.s32.totalorder (%p1213_p5), %s2984_s17, 1 }
 0x6c6   : >> { %v1228_v43 = vld [vmem:[%s3420_s29 + $0x40] sm:$0xff]  ;;  %v1229_v46 = vld [vmem:[%s3420_s29 + $0x48] sm:$0xff]  ;;  %v1230_v58 = vld [vmem:[%s3420_s29 + $0x50] sm:$0xff] }
 0x6c7   : >> { %v2237_v45 = vcombine.high %v1224_v42, %v1228_v43  ;;  %v2236_v47 = vcombine.low %v1224_v42, %v1228_v43  ;;  %v1232_v49 = vld [vmem:[%s3420_s29 + $0x80] sm:$0xff]  ;;  %v2239_v50 = vcombine.high %v1225_v44, %v1229_v46  ;;  %v2238_v51 = vcombine.low %v1225_v44, %v1229_v46  ;;  %v1233_v53 = vld [vmem:[%s3420_s29 + $0x88] sm:$0xff]  ;;  %v1227_v59 = vld [vmem:[%s3420_s29 + $0x18] sm:$0xff] }
 0x6c8   : >> { %v1236_v48 = vld [vmem:[%s3420_s29 + $0xc0] sm:$0xff]  ;;  %v1237_v54 = vld [vmem:[%s3420_s29 + $0xc8] sm:$0xff]  ;;  %v1231_v60 = vld [vmem:[%s3420_s29 + $0x58] sm:$0xff]  ;;  %v2241_v63 = vcombine.high %v1226_v55, %v1230_v58  ;;  %v2240_v5 = vcombine.low %v1226_v55, %v1230_v58 }
 0x6c9   : >> { %v2245_v52 = vcombine.high %v1232_v49, %v1236_v48  ;;  %1366 = vmatprep.subr.bf16.mxu0 %v2237_v45  ;;  %v2247_v57 = vcombine.high %v1233_v53, %v1237_v54  ;;  %1409 = vmatprep.subr.bf16.mxu1 %v2239_v50  ;;  %v2244_v61 = vcombine.low %v1232_v49, %v1236_v48  ;;  %v1234_v1 = vld [vmem:[%s3420_s29 + $0x90] sm:$0xff]  ;;  %v1235_v3 = vld [vmem:[%s3420_s29 + $0x98] sm:$0xff]  ;;  %v1564_v9 = vld [vmem:[%s3440_s14] sm:$0xff] }
 0x6ca   : >> { %1367 = vmatpush1.bf16.msra.mxu0 %v2236_v47  ;;  %1410 = vmatpush1.bf16.msra.mxu1 %v2238_v51  ;;  %v2246_v62 = vcombine.low %v1233_v53, %v1237_v54  ;;  %v2243_v0 = vcombine.high %v1227_v59, %v1231_v60  ;;  %v1238_v2 = vld [vmem:[%s3420_s29 + $0xd0] sm:$0xff]  ;;  %v1239_v4 = vld [vmem:[%s3420_s29 + $0xd8] sm:$0xff]  ;;  %v2242_v6 = vcombine.low %v1227_v59, %v1231_v60  ;;  %v1568_v10 = vld [vmem:[%s3440_s14 + $0x40] sm:$0xff] }
 0x6cb   : >> { %1368 = vmatprep.subr.bf16.mxu0 %v2245_v52  ;;  %1411 = vmatprep.subr.bf16.mxu1 %v2247_v57  ;;  %v2249_v7 = vcombine.high %v1234_v1, %v1238_v2  ;;  %v2251_v8 = vcombine.high %v1235_v3, %v1239_v4  ;;  %v1565_v11 = vld [vmem:[%s3440_s14 + $0x8] sm:$0xff]  ;;  %v2248_v21 = vcombine.low %v1234_v1, %v1238_v2  ;;  %v1572_v18 = vld [vmem:[%s3440_s14 + $0x80] sm:$0xff]  ;;  %v3463_v34 = vld [vmem:[%s3440_s14 + $0x10] sm:$0xff] }
 0x6cc   : >> { %v1569_v12 = vld [vmem:[%s3440_s14 + $0x48] sm:$0xff]  ;;  %v2250_v13 = vcombine.low %v1235_v3, %v1239_v4  ;;  %v2258_v22 = vcombine.high %v1564_v9, %v1568_v10  ;;  %v2257_v16 = vcombine.low %v1564_v9, %v1568_v10  ;;  %v1576_v20 = vld [vmem:[%s3440_s14 + $0xc0] sm:$0xff]  ;;  %v3469_v42 = vld [vmem:[%s3440_s14 + $0x18] sm:$0xff]  ;;  %v1273_v4 = vsub.s32 7, %v3319_v27 }
 0x6cd   : >> { %v2260_v14 = vcombine.high %v1565_v11, %v1569_v12  ;;  %v2259_v17 = vcombine.low %v1565_v11, %v1569_v12  ;;  %v1573_v23 = vld [vmem:[%s3440_s14 + $0x88] sm:$0xff]  ;;  %v2266_v25 = vcombine.high %v1572_v18, %v1576_v20  ;;  %v2265_v31 = vcombine.low %v1572_v18, %v1576_v20  ;;  %v3474_v44 = vld [vmem:[%s3440_s14 + $0x58] sm:$0xff]  ;;  %v1241_v49 = vld [vmem:[%s1240_s20] sm:$0xff] }
 0x6ce   : >> { %1369 = vmatpush1.bf16.msra.mxu0 %v2244_v61  ;;  %1412 = vmatpush1.bf16.msra.mxu1 %v2246_v62  ;;  %v1577_v26 = vld [vmem:[%s3440_s14 + $0xc8] sm:$0xff]  ;;  %v2263_v46 = vcombine.low %v3469_v42, %v3474_v44  ;;  %v2264_v47 = vcombine.high %v3469_v42, %v3474_v44  ;;  %v1246_v48 = vrot.slane %v1241_v49, %v884_v28  ;;  %v1269_v62 = vsub.s32 6, %v3319_v27  ;;  %v1578_v18 = vld [vmem:[%s3440_s14 + $0xd0] sm:$0xff] }
 0x6cf   : >> { %1452 = vmatprep.subr.bf16.mxu0 %v2241_v63  ;;  %1495 = vmatprep.subr.bf16.mxu1 %v2243_v0  ;;  %v2267_v32 = vcombine.low %v1573_v23, %v1577_v26  ;;  %v2268_v33 = vcombine.high %v1573_v23, %v1577_v26  ;;  %v1254_v50 = vrot.slane %v1241_v49, %v896_v37  ;;  %v1575_v26 = vld [vmem:[%s3440_s14 + $0x98] sm:$0xff] }
 0x6d0   : >> { %v1250_v51 = vrot.slane %v1241_v49, %v890_v30  ;;  %v1258_v52 = vrot.slane %v1241_v49, %v1111_v56  ;;  %v1262_v3 = vrot.slane %v1241_v49, %v1200_v19  ;;  %v1266_v9 = vrot.slane %v1241_v49, %v1206_v24 }
 0x6d1   : >> { %2252 = vmatmul.mubr.msk.bf16.vlgmr.msra.gmra.mrb[0].mxu0 %vm794_vm3, %v3393_v38  ;;  %2253 = vmatmul.mubr.msk.bf16.vlgmr.msra.gmra.mrb[0].mxu1 %vm794_vm3, %v3393_v38 }
 0x6d2   : >> { %1453 = vmatpush1.bf16.msra.mxu0 %v2240_v5  ;;  %1496 = vmatpush1.bf16.msra.mxu1 %v2242_v6 }
 0x6d3   : >> { %1454 = vmatprep.subr.bf16.mxu0 %v2249_v7  ;;  %1497 = vmatprep.subr.bf16.mxu1 %v2251_v8 }
 0x6d4   : >> { %1484 = vmatprep.mubr.bf16.mxu0 %v2886_v41  ;;  %1527 = vmatprep.mubr.bf16.mxu1 %v2886_v41  ;;  %v3466_v41 = vld [vmem:[%s3440_s14 + $0x50] sm:$0xff] }
 0x6d5   : >> { %v2262_v43 = vcombine.high %v3463_v34, %v3466_v41  ;;  %v2261_v45 = vcombine.low %v3463_v34, %v3466_v41 }
 0x6d6   : >> { %1455 = vmatpush1.bf16.msra.mxu0 %v2248_v21  ;;  %1498 = vmatpush1.bf16.msra.mxu1 %v2250_v13 }
 0x6d7   : >> { %1660 = vmatprep.subr.bf16.mxu0 %v2258_v22  ;;  %1701 = vmatprep.subr.bf16.mxu1 %v2260_v14 }
 0x6d9   : >> { %2254 = vmatmul.mubr.msk.bf16.vlgmr.msra.gmra.mrb[4].mxu0 %vm794_vm3, %v3393_v38  ;;  %2255 = vmatmul.mubr.msk.bf16.vlgmr.msra.gmra.mrb[4].mxu1 %vm794_vm3, %v3393_v38 }
 0x6df   : >> { %1661 = vmatpush1.bf16.xpose.msra.mxu0 %v2257_v16  ;;  %1702 = vmatpush1.bf16.xpose.msra.mxu1 %v2259_v17  ;;  %v1270_v16 = vrot.slane %v1241_v49, %v1269_v62  ;;  %v1574_v17 = vld [vmem:[%s3440_s14 + $0x90] sm:$0xff] }
 0x6e0   : >> { %1662 = vmatprep.subr.bf16.mxu0 %v2266_v25  ;;  %1703 = vmatprep.subr.bf16.mxu1 %v2268_v33  ;;  %v1274_v25 = vrot.slane %v1241_v49, %v1273_v4 }
 0x6e7   : >> { %1663 = vmatpush1.bf16.xpose.msra.mxu0 %v2265_v31  ;;  %1704 = vmatpush1.bf16.xpose.msra.mxu1 %v2267_v32  ;;  %v1579_v31 = vld [vmem:[%s3440_s14 + $0xd8] sm:$0xff] }
 0x6e8   : >> { %1742 = vmatprep.subr.bf16.mxu0 %v2262_v43  ;;  %1783 = vmatprep.subr.bf16.mxu1 %v2264_v47 }
 0x7a4   : >> { %v1400_v53 = vpop.f32.mrb[0].mxu0  ;;  %v1443_v55 = vpop.f32.mrb[0].mxu1 }
 0x7a5   : >> { %v1401_v54 = vadd.f32 %v1400_v53, %v1246_v48  ;;  %v1402_v57 = vpop.f32.mrb[1].mxu0  ;;  %v1444_v58 = vadd.f32 %v1443_v55, %v1254_v50  ;;  %v1445_v60 = vpop.f32.mrb[1].mxu1 }
 0x7a6   : >> { %v1403_v59 = vadd.f32 %v1402_v57, %v1250_v51  ;;  %v1404_v61 = vpop.f32.mrb[2].mxu0  ;;  %v1446_v63 = vadd.f32 %v1445_v60, %v1258_v52  ;;  %v1447_v1 = vpop.f32.mrb[2].mxu1 }
 0x7a7   : >> { %v1405_v0 = vadd.f32 %v1404_v61, %v1246_v48  ;;  %v1406_v2 = vpop.f32.mrb[3].mxu0  ;;  %v1540_v5 = vmax.f32 %v1444_v58, 0.0  ;;  %v1448_v6 = vadd.f32 %v1447_v1, %v1254_v50  ;;  %v1449_v8 = vpop.f32.mrb[3].mxu1  ;;  %v1538_v10 = vmax.f32 %v1401_v54, 0.0 }
 0x7a8   : >> { %v1407_v7 = vadd.f32 %v1406_v2, %v1250_v51  ;;  %v1541_v11 = vmax.f32 %v1446_v63, 0.0  ;;  %v1450_v21 = vadd.f32 %v1449_v8, %v1258_v52  ;;  %v1539_v13 = vmax.f32 %v1403_v59, 0.0 }
 0x7a9   : >> { %v1546_v12 = vmax.f32 %v1405_v0, 0.0  ;;  %v1548_v22 = vmax.f32 %v1448_v6, 0.0  ;;  %v2270_v52 = vcombine.high %v1574_v17, %v1578_v18  ;;  %v2272_v58 = vcombine.high %v1575_v26, %v1579_v31 }
 0x7aa   : >> { %v1547_v14 = vmax.f32 %v1407_v7, 0.0  ;;  %v1549_v23 = vmax.f32 %v1450_v21, 0.0 }
 0x7ab   : >> { %v1554_v20 = vpack.c.bf16 %v1546_v12, %v1538_v10  ;;  %v1556_v32 = vpack.c.bf16 %v1548_v22, %v1540_v5 }
 0x7ac   : >> { %v1555_v33 = vpack.c.bf16 %v1547_v14, %v1539_v13  ;;  %v1486_v43 = vpop.f32.mrb[4].mxu0  ;;  %v1557_v47 = vpack.c.bf16 %v1549_v23, %v1541_v11  ;;  %v1529_v51 = vpop.f32.mrb[4].mxu1 }
 0x7ad   : >> { %v1487_v48 = vadd.f32 %v1486_v43, %v1262_v3  ;;  %v1488_v50 = vpop.f32.mrb[5].mxu0  ;;  %v1530_v55 = vadd.f32 %v1529_v51, %v1270_v16  ;;  %v1531_v57 = vpop.f32.mrb[5].mxu1 }
 0x7ae   : >> { %1692 = vmatprep.mubr.bf16.mxu0 %v1555_v33  ;;  %v1489_v53 = vadd.f32 %v1488_v50, %v1266_v9  ;;  %v1490_v54 = vpop.f32.mrb[6].mxu0  ;;  %1733 = vmatprep.mubr.bf16.mxu1 %v1557_v47  ;;  %v1532_v61 = vadd.f32 %v1531_v57, %v1274_v25  ;;  %v1533_v63 = vpop.f32.mrb[6].mxu1 }
 0x7af   : >> { %1693 = vmatmul.mubr.bf16.vlgmr.msra.gmra.mrb[8].mxu0 %v1554_v20  ;;  %v1542_v59 = vmax.f32 %v1487_v48, 0.0  ;;  %v1491_v49 = vadd.f32 %v1490_v54, %v1262_v3  ;;  %v1492_v60 = vpop.f32.mrb[7].mxu0  ;;  %1734 = vmatmul.mubr.bf16.vlgmr.msra.gmra.mrb[8].mxu1 %v1556_v32  ;;  %v1544_v1 = vmax.f32 %v1530_v55, 0.0  ;;  %v1534_v5 = vadd.f32 %v1533_v63, %v1270_v16  ;;  %v1535_v6 = vpop.f32.mrb[7].mxu1 }
 0x7b0   : >> { %1743 = vmatpush1.bf16.xpose.msra.mxu0 %v2261_v45  ;;  %v1543_v0 = vmax.f32 %v1489_v53, 0.0  ;;  %v1493_v2 = vadd.f32 %v1492_v60, %v1266_v9  ;;  %1784 = vmatpush1.bf16.xpose.msra.mxu1 %v2263_v46  ;;  %v1545_v8 = vmax.f32 %v1532_v61, 0.0  ;;  %v1536_v3 = vadd.f32 %v1535_v6, %v1274_v25 }
 0x7b1   : >> { %v1550_v7 = vmax.f32 %v1491_v49, 0.0  ;;  %1744 = vmatprep.subr.bf16.mxu0 %v2270_v52  ;;  %v1552_v11 = vmax.f32 %v1534_v5, 0.0  ;;  %1785 = vmatprep.subr.bf16.mxu1 %v2272_v58  ;;  %v2269_v45 = vcombine.low %v1574_v17, %v1578_v18  ;;  %v2271_v9 = vcombine.low %v1575_v26, %v1579_v31 }
 0x7b2   : >> { %v1551_v10 = vmax.f32 %v1493_v2, 0.0  ;;  %v1553_v21 = vmax.f32 %v1536_v3, 0.0  ;;  %v1831_v58 = vrot.slane (%p1213_p5), %v3323_v29, %v1269_v62  ;;  %v1863_v6 = vrot.slane (%p1213_p5), %v3323_v29, %v1273_v4 }
 0x7b3   : >> { %v1558_v12 = vpack.c.bf16 %v1550_v7, %v1542_v59  ;;  %v1560_v41 = vpack.c.bf16 %v1552_v11, %v1544_v1 }
 0x7b4   : >> { %v1559_v34 = vpack.c.bf16 %v1551_v10, %v1543_v0  ;;  %v1561_v13 = vpack.c.bf16 %v1553_v21, %v1545_v8 }
 0x7b6   : >> { %1774 = vmatprep.mubr.bf16.mxu0 %v1559_v34  ;;  %1815 = vmatprep.mubr.bf16.mxu1 %v1561_v13 }
 0x7b8   : >> { %1745 = vmatpush1.bf16.xpose.msra.mxu0 %v2269_v45  ;;  %1786 = vmatpush1.bf16.xpose.msra.mxu1 %v2271_v9 }
 0x7bf   : >> { %1775 = vmatmul.mubr.bf16.vlgmr.msra.gmra.mrb[12].mxu0 %v1558_v12  ;;  %1816 = vmatmul.mubr.bf16.vlgmr.msra.gmra.mrb[12].mxu1 %v1560_v41 }
 0x882   : >> { %v1694_v42 = vpop.f32.mrb[8].mxu0  ;;  %v1735_v44 = vpop.f32.mrb[8].mxu1 }
 0x883   : >> { %v1696_v46 = vpop.f32.mrb[9].mxu0  ;;  %v1736_v22 = vadd.f32 %v1735_v44, %v1694_v42  ;;  %v1737_v14 = vpop.f32.mrb[9].mxu1 }
 0x884   : >> { %v1697_v16 = vpop.f32.mrb[10].mxu0  ;;  %v1738_v20 = vpop.f32.mrb[10].mxu1 }
 0x885   : >> { %v1699_v23 = vpop.f32.mrb[11].mxu0  ;;  %v1739_v25 = vadd.f32 %v1738_v20, %v1697_v16  ;;  %v1740_v32 = vpop.f32.mrb[11].mxu1 }
 0x892   : >> { %v1776_v33 = vpop.f32.mrb[12].mxu0  ;;  %v1817_v18 = vpop.f32.mrb[12].mxu1 }
 0x893   : >> { %v1777_v17 = vadd.f32 %v1776_v33, %v1736_v22  ;;  %v1778_v26 = vpop.f32.mrb[13].mxu0  ;;  %v1819_v31 = vpop.f32.mrb[13].mxu1 }
 0x894   : >> { %v1779_v43 = vpop.f32.mrb[14].mxu0  ;;  %v1820_v50 = vpop.f32.mrb[14].mxu1 }
 0x895   : >> { %v1818_v47 = vadd.f32 %v1817_v18, %v1777_v17  ;;  %v1780_v48 = vadd.f32 %v1779_v43, %v1739_v25  ;;  %v1781_v51 = vpop.f32.mrb[15].mxu0  ;;  %v1822_v52 = vpop.f32.mrb[15].mxu1  ;;  %1215 = sbr.rel (!%p1213_p5) target bundleno = 1729 (0x6c1), region = 185 }
 0x897   : >> { %v1824_v53 = vadd.f32 %v2862_v40, %v1818_v47   ;;  %v1821_v54 = vadd.f32 %v1820_v50, %v1780_v48 }
 0x899   : >> { %v1825_v55 = vadd.f32 %v2858_v39, %v1821_v54   ;;  %v3675_v40 = vmov %v1824_v53  ;;  %v1826_v57 = vadd.f32 (%p1213_p5), %v1824_v53, %v3387_v35 }
 0x89b   : >> { %v3674_v39 = vmov %v1825_v55  ;;  %v1827_v40 = vadd.f32 (%p1213_p5), %v1825_v55, %v3389_v36  ;;  %v1832_v59 = vadd.f32 (%p1213_p5), %v1831_v58, %v1826_v57 }
 0x89c   : > { %s3676_s18 = sld [smem:[#allocation30_spill]] (!%p2274_p3)  ;;  %v2887_v29 = vmov (!%p2274_p3), 0.0   ;;  %vm2888_vm7 = vmmov (!%p2274_p3), 0   ;;  %vm1912_vm8 = vcmask (!%p2274_p3), 1041409   ;;  %s3677_s11 = sld [smem:[#allocation31_spill]] (!%p2274_p3)  ;;  %vm1970_vm9 = vcmask (!%p2274_p3), 58368  }
 0x89d   : > { %v1833_v49 = vadd.f32 %v1831_v58, %v1827_v40  ;;  %v1834_v60 = vsel %vm794_vm3, %v1832_v59, 0.0  ;;  %2346 = vmatprep.subr.bf16.mxu0 (!%p2274_p3), %v2887_v29  ;;  %2350 = vmatprep.mubr.msk.bf16.mxu0 (!%p2274_p3), %vm2888_vm7, %v2887_v29 }
 0x89e   : > { %1835 = vadd.xlane.f32.xlu0 %v1834_v60 }
 0x89f   : > { %v1837_v61 = vsel %vm794_vm3, %v1833_v49, 0.0 }
 0x8a2   : > { %1838 = vadd.xlane.f32.xlu0 %v1837_v61  ;;  %v2528_v27 = vld [vmem:[%s3676_s18] sm:$0xff] (!%p2274_p3)   ;;  %v2529_v4 = vld [vmem:[%s3676_s18 + $0x8] sm:$0xff] (!%p2274_p3)  }
 0x8a3   : > { %2347 = vmatpush3.bf16.msra.mxu0 (!%p2274_p3), %v2528_v27  ;;  %v2275_v48 = vld [vmem:[%s3677_s11] ss:$0 sm:$0xff] (!%p2274_p3) }
 0x8a4   : > { %2348 = vmatprep.subr.bf16.mxu0 (!%p2274_p3), %v2887_v29 }
 0x8a7   : > { %2349 = vmatpush3.bf16.msra.mxu0 (!%p2274_p3), %v2529_v4 }
 0x92b   : > { %v1836_v63 = vpop.xlane.xlu0 %1835 }
 0x92c   : > { %v1840_v0 = vmul.f32 0.03125, %v1836_v63 }
 0x92e   : > { %v1842_v1 = vsub.f32 %v1832_v59, %v1840_v0 }
 0x92f   : > { %v1839_v2 = vpop.xlane.xlu0 %1838 }
 0x930   : > { %v1841_v28 = vmul.f32 0.03125, %v1839_v2  ;;  %v1844_v30 = vmul.f32 %v1842_v1, %v1842_v1 }
 0x932   : > { %v1843_v37 = vsub.f32 %v1833_v49, %v1841_v28  ;;  %v1846_v56 = vsel %vm794_vm3, %v1844_v30, 0.0 }
 0x933   : > { %1847 = vadd.xlane.f32.xlu1 %v1846_v56 }
 0x934   : > { %v1845_v19 = vmul.f32 %v1843_v37, %v1843_v37 }
 0x936   : > { %v1849_v24 = vsel %vm794_vm3, %v1845_v19, 0.0 }
 0x937   : > { %1850 = vadd.xlane.f32.xlu1 %v1849_v24 }
 0x9c0   : > { %v1848_v35 = vpop.xlane.xlu1 %1847 }
 0x9c1   : > { %v1852_v36 = vmul.f32 0.03125, %v1848_v35 }
 0x9c3   : > { %v1854_v38 = vadd.f32 1e-05, %v1852_v36 }
 0x9c4   : > { %v1851_v39 = vpop.xlane.xlu1 %1850 }
 0x9c5   : > { %2524 = vrsqrt.f32 %v1854_v38  ;;  %v1853_v62 = vmul.f32 0.03125, %v1851_v39 }
 0x9c7   : > { %v1855_v5 = vadd.f32 1e-05, %v1853_v62 }
 0x9c9   : > { %2526 = vrsqrt.f32 %v1855_v5 }
 0x9cf   : > { %v2525_v7 = vpop.eup %2524 }
 0x9d0   : > { %v1858_v8 = vmul.f32 %v2525_v7, %v1842_v1 }
 0x9d2   : > { %v1864_v3 = vmul.f32 %v1863_v6, %v1858_v8 }
 0x9d3   : > { %v2527_v10 = vpop.eup %2526 }
 0x9d4   : > { %v1870_v11 = vadd.f32 %v3300_v15, %v1864_v3  ;;  %v1859_v12 = vmul.f32 %v2527_v10, %v1843_v37  ;;  %1877 = sbr.rel (%p2274_p3) target bundleno = 3073 (0xc01), region = 123 }
 0x9d6   : > { %1872 = vst.msk [vmem:[#allocation2] sm:$0xff] %vm794_vm3, %v1870_v11  ;;  %v1865_v21 = vmul.f32 %v1863_v6, %v1859_v12 }
 0x9d8   : > { %v1871_v34 = vadd.f32 %v3300_v15, %v1865_v21  ;;  %v1878_v15 = vsel (!%p2274_p3), %vm794_vm3, %v1870_v11, 0.0 }
 0x9d9   : > { %v1879_v45 = vrot.slane (!%p2274_p3), %v1878_v15, 4 }
 0x9da   : > { %1873 = vst.msk [vmem:[#allocation2 + $0x8] sm:$0xff] %vm794_vm3, %v1871_v34  ;;  %v1885_v41 = vsel (!%p2274_p3), %vm794_vm3, %v1871_v34, 0.0 }
 0x9db   : > { %v1886_v13 = vrot.slane %v1885_v41, 4  ;;  %v1880_v9 = vadd.f32 %v1879_v45, %v1878_v15 }
 0x9dd   : > { %v1887_v42 = vadd.f32 %v1886_v13, %v1885_v41  ;;  %v1881_v44 = vrot.slane %v1880_v9, 2 }
 0x9df   : > { %v1888_v46 = vrot.slane %v1887_v42, 2  ;;  %v1882_v22 = vadd.f32 %v1881_v44, %v1880_v9 }
 0x9e1   : > { %v1889_v14 = vadd.f32 %v1888_v46, %v1887_v42  ;;  %v1883_v16 = vrot.slane %v1882_v22, 1 }
 0x9e3   : > { %v1890_v20 = vrot.slane %v1889_v14, 1  ;;  %v1884_v23 = vadd.f32 %v1883_v16, %v1882_v22 }
 0x9e5   : > { %v1891_v25 = vadd.f32 %v1890_v20, %v1889_v14  ;;  %v1893_v32 = vmul.f32 0.125, %v1884_v23 }
 0x9e7   : > { %v1894_v33 = vmul.f32 0.125, %v1891_v25  ;;  %v1895_v17 = vpack.c.bf16 %v1893_v32, %v1893_v32 }
 0x9e9   : > { %v1896_v18 = vpack.c.bf16 %v1894_v33, %v1894_v33  ;;  %v1910_v26 = vunpack.c.l.b16 %v1895_v17 }
 0x9eb   : > { %v1911_v31 = vunpack.c.l.b16 %v1896_v18 }
 0x9ed   : > { %v1913_v43 = vsel %vm1912_vm8, %v1911_v31, %v1910_v26 }
 0x9ee   : > { %v1914_v47 = vpack.c.b16 %v1913_v43, %v1913_v43 }
 0x9f0   : > { %2351 = vmatmul.mubr.msk.bf16.vlgmr.msra.gmra.mrb[0].mxu0 %vm794_vm3, %v1914_v47 }
 0xac3   : > { %v1964_v50 = vpop.f32.mrb[0].mxu0 }
 0xac4   : > { %v1965_v51 = vadd.f32 %v2275_v48, %v1964_v50  ;;  %v2352_v52 = vpop.f32.mrb[1].mxu0 }
 0xac5   : > { %v1967_v53 = vpop.f32.mrb[2].mxu0 }
 0xac6   : > { %v2353_v54 = vpop.f32.mrb[3].mxu0  ;;  %v1971_v55 = vsel %vm1970_vm9, %v1965_v51, -inf }
 0xac7   : > { %1972 = vmax.xlane.f32.xlu0 %v1971_v55 }
 0xb54   : > { %v1973_v57 = vpop.xlane.xlu0 %1972 }
 0xb55   : > { %v1974_v58 = vsub.f32 %v1965_v51, %v1973_v57 }
 0xb57   : > { %v1975_v40 = vmul.f32 1.442695, %v1974_v58 }
 0xb59   : > { %2530 = vpow2.f32 %v1975_v40 }
 0xb63   : > { %v2531_v59 = vpop.eup %2530 }
 0xb64   : > { %v1977_v49 = vsel %vm1970_vm9, %v2531_v59, 0.0 }
 0xb65   : > { %1978 = vadd.xlane.f32.xlu0 %v1977_v49 }
 0xbf2   : > { %v1979_v60 = vpop.xlane.xlu0 %1978 }
 0xbf3   : > { %2532 = vrcp.f32 %v1979_v60 }
 0xbfd   : > { %v2533_v61 = vpop.eup %2532 }
 0xbfe   : > { %v1981_v63 = vmul.f32 %v2533_v61, %v2531_v59 }
 0xc00   : > { %1982 = vst.msk [vmem:[#allocation15] sm:$0x3] %vm1970_vm9, %v1981_v63 }
 0xc01 PF: > { %p2419_p7 = scmp.eq.s32.totalorder %s2984_s17, 1  ;;  %s2889_s23 = smov [#allocation15]  }
 0xc02   : > { %s1990_s15 = sshll.u32 %s2889_s23, 4  ;;  %s1991_s15 = int_to_ptr.vmem [resolvable:$true] %s1990_s15 }
 0xc03   : > { %s2766_s24 = scalar_lea.vmem %s1991_s15, 32  ;;  %p2773_p10 = scmp.lt.s32.totalorder %s1991_s15, %s1991_s15 }
 0xc04   : > { %p2767_p8 = scmp.ne.s32.totalorder %s1991_s15, %s2766_s24  ;;  %p2774_p1 = scmp.lt.s32.totalorder %s2766_s24, %s2766_s24 }
 0xc06   : > { %p2768_p13 = pnand %p2767_p8, %p2419_p7  ;;  %p2775_p2 = por %p2774_p1, %p2773_p10 }
 0xc08   : > { %p2769_p9 = pneg %p2768_p13 }
 0xc0a   : > { %p2776_p4 = pnand %p2775_p2, %p2769_p9 }
 0xc0c   : > { %2779 = shalt.err (!%p2776_p4)
}
 0xc0d   : > { %s3678_s10 = sld [smem:[#allocation34_spill]] }
 0xc13   : > { %s2780_s4 = scalar_lea.hbm %s3678_s10, 32 }
 0xc14   : > { %p2781_p11 = scmp.ne.s32.totalorder %s3678_s10, %s2780_s4  ;;  %p2786_p0 = scmp.lt.u32.totalorder %s2780_s4, %s3678_s10 }
 0xc16   : > { %p2782_p6 = pnand %p2781_p11, %p2419_p7 }
 0xc18   : > { %p2783_p12 = pneg %p2782_p6 }
 0xc1a   : > { %p2788_p5 = pnand %p2786_p0, %p2783_p12 }
 0xc1c   : > { %2791 = shalt.err (!%p2788_p5)
}
 0xc1d   : > { %2381 = dma.vmem_to_hbm [thread:$0]  (%p2419_p7), %s1991_s15, 32, %s3678_s10, [#allocation5]  }
 0xc1e   : > { %2837 = dma.done.wait (%p2419_p7), [#allocation5], 32  }
 0xc1f   : > { %2839 = vsyncadd (%p2419_p7), [#allocation5], 4294967264 }
 0xc20 PF: > { %s3679_s16 = sld [smem:[#allocation23_spill]]  ;;  %s3680_s14 = sld [smem:[#allocation21_spill]] }
 0xc21   : > { %s3681_s15 = sld [smem:[#allocation24_spill]]  ;;  %s3682_s29 = smov %s2846_s30 }
 0xc26   : > { %p25_p3 = scmp.ge.s32.totalorder %s3679_s16, 4   ;;  %s3683_s30 = smov %s3680_s14 }
 0xc28   :  { %27 = sbr.rel (!%p25_p3) target bundleno = 16 (0x10), region = 196 }
 0xc2f   :  { %2003 = vsyncpa [#allocation4], 1 }
 0xc30   :  { %2005 = vsyncpa [#allocation4 + $0x1], 1 }
 0xc31   :  { %2006 = vsyncpa [#allocation7], 1 }
 0xc32   :  { %2007 = vsyncpa [#allocation10], 1 }
 0xc33   :  { %2008 = vsyncpa [#allocation5], 1 }
 0xc34   :  { %2010 = vsyncpa [#allocation5 + $0x1], 1 }

</bundles_post_ra>
